<compile_context>
chip_gen: v6e
topology: v6e:2x2x1
jax: 0.10.0
libtpu: 0.0.40
codegen_flags: <defaults>
</compile_context>

<pallas_src>
import jax
import jax.numpy as jnp
from jax import lax
from jax.experimental import pallas as pl
from jax.experimental.pallas import tpu as pltpu

EPS = 1e-5     # nn.BatchNorm2d default eps
LANE = 128     # TPU lane width: output-channel dims are padded to this


def _round_up(x, m):
    return (x + m - 1) // m * m


# ----------------------------- Pallas kernel ------------------------------- #

def _make_conv_stats_kernel(h, w, apply_input_act, compute_dtype):
    """Conv3x3 (+ optional fused input BN+ReLU) + fused per-batch BN stats."""
    hw = h * w

    def kernel(x_ref, w_ref, scale_ref, shift_ref,
               y_ref, sum_ref, sq_ref, a_scratch, taps_scratch):
        # x_ref      : (1, h, w, Cin)    UNPADDED pre-activation input tile
        # w_ref      : (9*Cin, Cout)     fused conv weights (compute_dtype)
        # scale_ref, shift_ref : (1, 1, Cin) f32  fused BN affine of prev stage
        # y_ref      : (1, h*w, Cout)    pre-BN conv output (compute_dtype)
        # sum_ref, sq_ref : (1, 1, Cout) f32 per-batch partial BN stats
        # a_scratch  : (h+2, w+2, Cin)   compute_dtype, zero-halo activated tile
        # taps_scratch: (h, w, 9*Cin)    compute_dtype, in-VMEM im2col block
        cin = x_ref.shape[3]

        x = x_ref[0].astype(jnp.float32)                       # (h, w, Cin)
        if apply_input_act:
            # previous stage's BN+ReLU fused onto the freshly-landed tile; the
            # conv zero-padding applies to the *post*-activation tensor, which
            # the explicitly-zeroed halo below reproduces exactly.
            x = jnp.maximum(x * scale_ref[...] + shift_ref[...], 0.0)

        # zero the 1-pixel halo (four thin strips; interior overwritten below)
        zrow = jnp.zeros((1, w + 2, cin), compute_dtype)
        zcol = jnp.zeros((h + 2, 1, cin), compute_dtype)
        a_scratch[0:1, :, :] = zrow
        a_scratch[h + 1:h + 2, :, :] = zrow
        a_scratch[:, 0:1, :] = zcol
        a_scratch[:, w + 1:w + 2, :] = zcol
        a_scratch[1:h + 1, 1:w + 1, :] = x.astype(compute_dtype)

        # gather the nine 3x3 taps once into the VMEM im2col block
        # (no HBM im2col; for stage 2 the column blocks are lane-aligned)
        for k in range(9):
            dy, dx = k // 3, k % 3
            taps_scratch[:, :, k * cin:(k + 1) * cin] = \
                a_scratch[dy:dy + h, dx:dx + w, :]

        # single MXU dot, K = 9*Cin, f32 accumulation
        acc = jnp.dot(taps_scratch[...].reshape(hw, 9 * cin), w_ref[...],
                      preferred_element_type=jnp.float32)       # (hw, Cout)

        y_ref[0] = acc.astype(y_ref.dtype)
        # fused BatchNorm batch statistics (per-batch partials, f32)
        sum_ref[0] = jnp.sum(acc, axis=0, keepdims=True)
        sq_ref[0] = jnp.sum(acc * acc, axis=0, keepdims=True)

    return kernel


# ------------------------------- stage wrapper ------------------------------ #

def _conv_bn_stage(x_nhwc, w_flat, in_scale, in_shift, gamma, beta, *,
                   apply_input_act, compute_dtype):
    """One (fused input BN+ReLU ->) conv3x3 -> fused batch-stats stage.

    x_nhwc   : (N, H, W, Cin) UNPADDED pre-activation input
    w_flat   : (9*Cin, Cout)  fused conv weights (no bias)
    in_scale/in_shift : (1, 1, Cin) fused BN affine of the previous stage
    gamma/beta        : (Cout,) BN affine parameters of *this* stage
    Returns (y, out_scale, out_shift):
      y : (N, H*W, Cout) pre-BN conv output; out_scale/out_shift: (1, 1, Cout).
    """
    n, h, w, cin = x_nhwc.shape
    hw = h * w
    cout = w_flat.shape[-1]

    kernel = _make_conv_stats_kernel(h, w, apply_input_act, compute_dtype)

    y, psum, psq = pl.pallas_call(
        kernel,
        out_shape=(jax.ShapeDtypeStruct((n, hw, cout), compute_dtype),
                   jax.ShapeDtypeStruct((n, 1, cout), jnp.float32),
                   jax.ShapeDtypeStruct((n, 1, cout), jnp.float32)),
        grid_spec=pltpu.PrefetchScalarGridSpec(
            num_scalar_prefetch=0,
            grid=(n,),
            in_specs=[
                pl.BlockSpec((1, h, w, cin), lambda i: (i, 0, 0, 0)),
                pl.BlockSpec((9 * cin, cout), lambda i: (0, 0)),
                pl.BlockSpec((1, 1, cin), lambda i: (0, 0, 0)),
                pl.BlockSpec((1, 1, cin), lambda i: (0, 0, 0)),
            ],
            out_specs=(pl.BlockSpec((1, hw, cout), lambda i: (i, 0, 0)),
                       pl.BlockSpec((1, 1, cout), lambda i: (i, 0, 0)),
                       pl.BlockSpec((1, 1, cout), lambda i: (i, 0, 0))),
            scratch_shapes=[
                pltpu.VMEM((h + 2, w + 2, cin), compute_dtype),
                pltpu.VMEM((h, w, 9 * cin), compute_dtype),
            ],
        ),
        compiler_params=pltpu.CompilerParams(
            dimension_semantics=("parallel",),   # stats are per-batch partials
            vmem_limit_bytes=32 * 1024 * 1024),
    )(x_nhwc, w_flat.astype(compute_dtype), in_scale, in_shift)

    # combine per-batch partial stats -> training-mode BN scale/shift
    cnt = jnp.float32(n * hw)
    mean = jnp.sum(psum, axis=0) / cnt                        # (1, cout)
    var = jnp.maximum(jnp.sum(psq, axis=0) / cnt - mean * mean, 0.0)
    out_scale = gamma.reshape(1, cout) / jnp.sqrt(var + EPS)
    out_shift = beta.reshape(1, cout) - mean * out_scale
    return y, out_scale.reshape(1, 1, cout), out_shift.reshape(1, 1, cout)


# ------------------------------- public wrapper ----------------------------- #

def double_conv_pallas(x_nchw, params, compute_dtype=jnp.bfloat16):
    w1, b1, g1, be1, w2, b2, g2, be2 = params
    del b1, b2  # conv bias cancels exactly through training-mode BatchNorm

    n, cin, hh, ww = x_nchw.shape
    cout = w1.shape[0]
    cpad = _round_up(cout, LANE)   # lane-dense conv outputs / stores

    def prep_w(wt, cin_pad, cout_pad):
        # (O, I, 3, 3) -> (9, I, O) -> pad channels -> (9*cin_pad, cout_pad)
        o, i = wt.shape[0], wt.shape[1]
        w9 = jnp.transpose(wt.astype(jnp.float32), (2, 3, 1, 0)).reshape(9, i, o)
        w9 = jnp.pad(w9, ((0, 0), (0, cin_pad - i), (0, cout_pad - o)))
        return w9.reshape(9 * cin_pad, cout_pad)

    w1_f = prep_w(w1, cin, cpad)     # stage-1 Cin stays at its natural size
    w2_f = prep_w(w2, cpad, cpad)    # stage-2 contraction depth K = 9*cpad

    def pad_c(v):
        return jnp.pad(v.astype(jnp.float32), (0, cpad - v.shape[0]))

    g1p, be1p, g2p, be2p = pad_c(g1), pad_c(be1), pad_c(g2), pad_c(be2)

    # NCHW -> NHWC once; zero-padding happens inside the kernels (no HBM pad)
    x = jnp.transpose(x_nchw, (0, 2, 3, 1)).astype(jnp.float32)

    dummy = jnp.zeros((1, 1, cin), jnp.float32)
    y1, sc1, sh1 = _conv_bn_stage(x, w1_f, dummy, dummy, g1p, be1p,
                                  apply_input_act=False,
                                  compute_dtype=compute_dtype)

    # Stage-1's BN+ReLU is fused into the stage-2 conv kernel; y1 is consumed
    # raw and unpadded (pure metadata reshape, no extra HBM pass).
    y1_nhwc = y1.reshape(n, hh, ww, cpad)
    y2, sc2, sh2 = _conv_bn_stage(y1_nhwc, w2_f, sc1, sh1, g2p, be2p,
                                  apply_input_act=True,
                                  compute_dtype=compute_dtype)

    # final BN + ReLU as an XLA epilogue: fuses with the channel slice and the
    # NHWC -> NCHW transpose into one elementwise pass over y2.
    out = jnp.maximum(y2.astype(jnp.float32) * sc2 + sh2, 0.0)
    out = out.reshape(n, hh, ww, cpad)[:, :, :, :cout]
    # TODO(synk): BatchNorm running_mean/running_var buffer updates are not
    #             reproduced (they do not affect the training-mode forward).
    return jnp.transpose(out, (0, 3, 1, 2))      # NHWC -> NCHW


# ------------------------------- pure-JAX reference ------------------------- #

def double_conv_ref(x, params):
    w1, b1, g1, be1, w2, b2, g2, be2 = params

    def conv(x, w, b):
        y = lax.conv_general_dilated(x, w, (1, 1), ((1, 1), (1, 1)),
                                     dimension_numbers=("NCHW", "OIHW", "NCHW"))
        return y + b[None, :, None, None]

    def bn_relu(x, gamma, beta):
        mean = jnp.mean(x, axis=(0, 2, 3), keepdims=True)
        var = jnp.mean(jnp.square(x - mean), axis=(0, 2, 3), keepdims=True)
        y = (x - mean) / jnp.sqrt(var + EPS)
        y = y * gamma[None, :, None, None] + beta[None, :, None, None]
        return jnp.maximum(y, 0.0)

    h = bn_relu(conv(x, w1, b1), g1, be1)
    return bn_relu(conv(h, w2, b2), g2, be2)


# ------------------------------------ main ---------------------------------- #

if __name__ == "__main__":
    key = jax.random.PRNGKey(0)
    n, cin, cout, hh, ww = 2, 4, 8, 16, 16
    keys = jax.random.split(key, 9)

    x = jax.random.normal(keys[0], (n, cin, hh, ww), jnp.float32)

    k1 = 1.0 / jnp.sqrt(jnp.float32(cin * 9))
    k2 = 1.0 / jnp.sqrt(jnp.float32(cout * 9))
    w1 = jax.random.uniform(keys[1], (cout, cin, 3, 3), jnp.float32, -k1, k1)
    b1 = jax.random.uniform(keys[2], (cout,), jnp.float32, -k1, k1)
    w2 = jax.random.uniform(keys[3], (cout, cout, 3, 3), jnp.float32, -k2, k2)
    b2 = jax.random.uniform(keys[4], (cout,), jnp.float32, -k2, k2)
    g1 = jax.random.uniform(keys[5], (cout,), jnp.float32, 0.5, 1.5)
    be1 = jax.random.uniform(keys[6], (cout,), jnp.float32, -0.5, 0.5)
    g2 = jax.random.uniform(keys[7], (cout,), jnp.float32, 0.5, 1.5)
    be2 = jax.random.uniform(keys[8], (cout,), jnp.float32, -0.5, 0.5)

    params = (w1, b1, g1, be1, w2, b2, g2, be2)

    ref = jax.block_until_ready(double_conv_ref(x, params))

    # f32 MXU path: strict numerical check against the f32 reference.
    out_f32 = jax.block_until_ready(
        double_conv_pallas(x, params, compute_dtype=jnp.float32))
    assert out_f32.shape == (n, cout, hh, ww), out_f32.shape
    err_f32 = float(jnp.max(jnp.abs(out_f32 - ref)))
    assert err_f32 < 1e-3, f"f32 path max abs err {err_f32}"

    # bf16 MXU path (default): bf16 matmul inputs + f32 accumulation.  The BN
    # normalization amplifies bf16 input rounding, hence the looser tolerance.
    out_bf16 = jax.block_until_ready(
        double_conv_pallas(x, params, compute_dtype=jnp.bfloat16))
    assert out_bf16.shape == (n, cout, hh, ww), out_bf16.shape
    err_bf16 = float(jnp.max(jnp.abs(out_bf16 - ref)))
    assert err_bf16 < 2e-1, f"bf16 path max abs err {err_bf16}"

    print("KERNEL_OK")
</pallas_src>

<mosaic_0001>
module attributes {stable_mosaic.version = 11 : i64} {
  func.func @kernel(%arg0: i32, %arg1: memref<1x16x16x4xf32, #tpu.memory_space<vmem>>, %arg2: memref<36x128xf32, #tpu.memory_space<vmem>>, %arg3: memref<1x1x4xf32, #tpu.memory_space<vmem>>, %arg4: memref<1x1x4xf32, #tpu.memory_space<vmem>>, %arg5: memref<1x256x128xf32, #tpu.memory_space<vmem>>, %arg6: memref<1x1x128xf32, #tpu.memory_space<vmem>>, %arg7: memref<1x1x128xf32, #tpu.memory_space<vmem>>, %arg8: memref<18x18x4xf32, #tpu.memory_space<vmem>>, %arg9: memref<16x16x36xf32, #tpu.memory_space<vmem>>) attributes {dimension_semantics = [#tpu.dimension_semantics<parallel>], iteration_bounds = array<i64: 2>, scalar_prefetch = 0 : i64, scratch_operands = 2 : i64, tpu.core_type = #tpu.core_type<tc>, window_params = [{transform_indices = @transform_0, window_bounds = array<i64: 1, 16, 16, 4>}, {pipeline_mode = #tpu.pipeline_mode<synchronous>, transform_indices = @transform_1, window_bounds = array<i64: 36, 128>}, {pipeline_mode = #tpu.pipeline_mode<synchronous>, transform_indices = @transform_2, window_bounds = array<i64: 1, 1, 4>}, {pipeline_mode = #tpu.pipeline_mode<synchronous>, transform_indices = @transform_3, window_bounds = array<i64: 1, 1, 4>}, {transform_indices = @transform_4, window_bounds = array<i64: 1, 256, 128>}, {transform_indices = @transform_5, window_bounds = array<i64: 1, 1, 128>}, {transform_indices = @transform_6, window_bounds = array<i64: 1, 1, 128>}]} {
    %c0 = arith.constant 0 : index
    %c0_0 = arith.constant 0 : index
    %c0_1 = arith.constant 0 : index
    %c0_2 = arith.constant 0 : index
    %0 = vector.load %arg1[%c0, %c0_0, %c0_1, %c0_2] : memref<1x16x16x4xf32, #tpu.memory_space<vmem>>, vector<1x16x16x4xf32>
    %1 = vector.shape_cast %0 : vector<1x16x16x4xf32> to vector<16x16x4xf32>
    %cst = arith.constant 0.000000e+00 : f32
    %2 = vector.broadcast %cst : f32 to vector<1x18x4xf32>
    %cst_3 = arith.constant 0.000000e+00 : f32
    %3 = vector.broadcast %cst_3 : f32 to vector<18x1x4xf32>
    %c0_4 = arith.constant 0 : index
    %c0_5 = arith.constant 0 : index
    %c0_6 = arith.constant 0 : index
    %4 = vector.load %arg8[%c0_4, %c0_5, %c0_6] : memref<18x18x4xf32, #tpu.memory_space<vmem>>, vector<1x18x4xf32>
    tpu.vector_store %arg8[%c0_4, %c0_5, %c0_6], %2 {strides = array<i32>} : memref<18x18x4xf32, #tpu.memory_space<vmem>>, vector<1x18x4xf32>,
    %c17 = arith.constant 17 : index
    %c0_7 = arith.constant 0 : index
    %c0_8 = arith.constant 0 : index
    %5 = vector.load %arg8[%c17, %c0_7, %c0_8] : memref<18x18x4xf32, #tpu.memory_space<vmem>>, vector<1x18x4xf32>
    tpu.vector_store %arg8[%c17, %c0_7, %c0_8], %2 {strides = array<i32>} : memref<18x18x4xf32, #tpu.memory_space<vmem>>, vector<1x18x4xf32>,
    %c0_9 = arith.constant 0 : index
    %c0_10 = arith.constant 0 : index
    %c0_11 = arith.constant 0 : index
    %6 = vector.load %arg8[%c0_9, %c0_10, %c0_11] : memref<18x18x4xf32, #tpu.memory_space<vmem>>, vector<18x1x4xf32>
    tpu.vector_store %arg8[%c0_9, %c0_10, %c0_11], %3 {strides = array<i32>} : memref<18x18x4xf32, #tpu.memory_space<vmem>>, vector<18x1x4xf32>,
    %c0_12 = arith.constant 0 : index
    %c17_13 = arith.constant 17 : index
    %c0_14 = arith.constant 0 : index
    %7 = vector.load %arg8[%c0_12, %c17_13, %c0_14] : memref<18x18x4xf32, #tpu.memory_space<vmem>>, vector<18x1x4xf32>
    tpu.vector_store %arg8[%c0_12, %c17_13, %c0_14], %3 {strides = array<i32>} : memref<18x18x4xf32, #tpu.memory_space<vmem>>, vector<18x1x4xf32>,
    %c1 = arith.constant 1 : index
    %c1_15 = arith.constant 1 : index
    %c0_16 = arith.constant 0 : index
    %8 = vector.load %arg8[%c1, %c1_15, %c0_16] : memref<18x18x4xf32, #tpu.memory_space<vmem>>, vector<16x16x4xf32>
    tpu.vector_store %arg8[%c1, %c1_15, %c0_16], %1 {strides = array<i32>} : memref<18x18x4xf32, #tpu.memory_space<vmem>>, vector<16x16x4xf32>,
    %c0_17 = arith.constant 0 : index
    %c0_18 = arith.constant 0 : index
    %c0_19 = arith.constant 0 : index
    %9 = vector.load %arg8[%c0_17, %c0_18, %c0_19] : memref<18x18x4xf32, #tpu.memory_space<vmem>>, vector<16x16x4xf32>
    %c0_20 = arith.constant 0 : index
    %c0_21 = arith.constant 0 : index
    %c0_22 = arith.constant 0 : index
    %10 = vector.load %arg9[%c0_20, %c0_21, %c0_22] : memref<16x16x36xf32, #tpu.memory_space<vmem>>, vector<16x16x4xf32>
    tpu.vector_store %arg9[%c0_20, %c0_21, %c0_22], %9 {strides = array<i32>} : memref<16x16x36xf32, #tpu.memory_space<vmem>>, vector<16x16x4xf32>,
    %c0_23 = arith.constant 0 : index
    %c1_24 = arith.constant 1 : index
    %c0_25 = arith.constant 0 : index
    %11 = vector.load %arg8[%c0_23, %c1_24, %c0_25] : memref<18x18x4xf32, #tpu.memory_space<vmem>>, vector<16x16x4xf32>
    %c0_26 = arith.constant 0 : index
    %c0_27 = arith.constant 0 : index
    %c4 = arith.constant 4 : index
    %12 = vector.load %arg9[%c0_26, %c0_27, %c4] : memref<16x16x36xf32, #tpu.memory_space<vmem>>, vector<16x16x4xf32>
    tpu.vector_store %arg9[%c0_26, %c0_27, %c4], %11 {strides = array<i32>} : memref<16x16x36xf32, #tpu.memory_space<vmem>>, vector<16x16x4xf32>,
    %c0_28 = arith.constant 0 : index
    %c2 = arith.constant 2 : index
    %c0_29 = arith.constant 0 : index
    %13 = vector.load %arg8[%c0_28, %c2, %c0_29] : memref<18x18x4xf32, #tpu.memory_space<vmem>>, vector<16x16x4xf32>
    %c0_30 = arith.constant 0 : index
    %c0_31 = arith.constant 0 : index
    %c8 = arith.constant 8 : index
    %14 = vector.load %arg9[%c0_30, %c0_31, %c8] : memref<16x16x36xf32, #tpu.memory_space<vmem>>, vector<16x16x4xf32>
    tpu.vector_store %arg9[%c0_30, %c0_31, %c8], %13 {strides = array<i32>} : memref<16x16x36xf32, #tpu.memory_space<vmem>>, vector<16x16x4xf32>,
    %c1_32 = arith.constant 1 : index
    %c0_33 = arith.constant 0 : index
    %c0_34 = arith.constant 0 : index
    %15 = vector.load %arg8[%c1_32, %c0_33, %c0_34] : memref<18x18x4xf32, #tpu.memory_space<vmem>>, vector<16x16x4xf32>
    %c0_35 = arith.constant 0 : index
    %c0_36 = arith.constant 0 : index
    %c12 = arith.constant 12 : index
    %16 = vector.load %arg9[%c0_35, %c0_36, %c12] : memref<16x16x36xf32, #tpu.memory_space<vmem>>, vector<16x16x4xf32>
    tpu.vector_store %arg9[%c0_35, %c0_36, %c12], %15 {strides = array<i32>} : memref<16x16x36xf32, #tpu.memory_space<vmem>>, vector<16x16x4xf32>,
    %c1_37 = arith.constant 1 : index
    %c1_38 = arith.constant 1 : index
    %c0_39 = arith.constant 0 : index
    %17 = vector.load %arg8[%c1_37, %c1_38, %c0_39] : memref<18x18x4xf32, #tpu.memory_space<vmem>>, vector<16x16x4xf32>
    %c0_40 = arith.constant 0 : index
    %c0_41 = arith.constant 0 : index
    %c16 = arith.constant 16 : index
    %18 = vector.load %arg9[%c0_40, %c0_41, %c16] : memref<16x16x36xf32, #tpu.memory_space<vmem>>, vector<16x16x4xf32>
    tpu.vector_store %arg9[%c0_40, %c0_41, %c16], %17 {strides = array<i32>} : memref<16x16x36xf32, #tpu.memory_space<vmem>>, vector<16x16x4xf32>,
    %c1_42 = arith.constant 1 : index
    %c2_43 = arith.constant 2 : index
    %c0_44 = arith.constant 0 : index
    %19 = vector.load %arg8[%c1_42, %c2_43, %c0_44] : memref<18x18x4xf32, #tpu.memory_space<vmem>>, vector<16x16x4xf32>
    %c0_45 = arith.constant 0 : index
    %c0_46 = arith.constant 0 : index
    %c20 = arith.constant 20 : index
    %20 = vector.load %arg9[%c0_45, %c0_46, %c20] : memref<16x16x36xf32, #tpu.memory_space<vmem>>, vector<16x16x4xf32>
    tpu.vector_store %arg9[%c0_45, %c0_46, %c20], %19 {strides = array<i32>} : memref<16x16x36xf32, #tpu.memory_space<vmem>>, vector<16x16x4xf32>,
    %c2_47 = arith.constant 2 : index
    %c0_48 = arith.constant 0 : index
    %c0_49 = arith.constant 0 : index
    %21 = vector.load %arg8[%c2_47, %c0_48, %c0_49] : memref<18x18x4xf32, #tpu.memory_space<vmem>>, vector<16x16x4xf32>
    %c0_50 = arith.constant 0 : index
    %c0_51 = arith.constant 0 : index
    %c24 = arith.constant 24 : index
    %22 = vector.load %arg9[%c0_50, %c0_51, %c24] : memref<16x16x36xf32, #tpu.memory_space<vmem>>, vector<16x16x4xf32>
    tpu.vector_store %arg9[%c0_50, %c0_51, %c24], %21 {strides = array<i32>} : memref<16x16x36xf32, #tpu.memory_space<vmem>>, vector<16x16x4xf32>,
    %c2_52 = arith.constant 2 : index
    %c1_53 = arith.constant 1 : index
    %c0_54 = arith.constant 0 : index
    %23 = vector.load %arg8[%c2_52, %c1_53, %c0_54] : memref<18x18x4xf32, #tpu.memory_space<vmem>>, vector<16x16x4xf32>
    %c0_55 = arith.constant 0 : index
    %c0_56 = arith.constant 0 : index
    %c28 = arith.constant 28 : index
    %24 = vector.load %arg9[%c0_55, %c0_56, %c28] : memref<16x16x36xf32, #tpu.memory_space<vmem>>, vector<16x16x4xf32>
    tpu.vector_store %arg9[%c0_55, %c0_56, %c28], %23 {strides = array<i32>} : memref<16x16x36xf32, #tpu.memory_space<vmem>>, vector<16x16x4xf32>,
    %c2_57 = arith.constant 2 : index
    %c2_58 = arith.constant 2 : index
    %c0_59 = arith.constant 0 : index
    %25 = vector.load %arg8[%c2_57, %c2_58, %c0_59] : memref<18x18x4xf32, #tpu.memory_space<vmem>>, vector<16x16x4xf32>
    %c0_60 = arith.constant 0 : index
    %c0_61 = arith.constant 0 : index
    %c32 = arith.constant 32 : index
    %26 = vector.load %arg9[%c0_60, %c0_61, %c32] : memref<16x16x36xf32, #tpu.memory_space<vmem>>, vector<16x16x4xf32>
    tpu.vector_store %arg9[%c0_60, %c0_61, %c32], %25 {strides = array<i32>} : memref<16x16x36xf32, #tpu.memory_space<vmem>>, vector<16x16x4xf32>,
    %c0_62 = arith.constant 0 : index
    %c0_63 = arith.constant 0 : index
    %c0_64 = arith.constant 0 : index
    %27 = vector.load %arg9[%c0_62, %c0_63, %c0_64] : memref<16x16x36xf32, #tpu.memory_space<vmem>>, vector<16x16x36xf32>
    %28 = vector.shape_cast %27 : vector<16x16x36xf32> to vector<256x36xf32>
    %c0_65 = arith.constant 0 : index
    %c0_66 = arith.constant 0 : index
    %29 = vector.load %arg2[%c0_65, %c0_66] : memref<36x128xf32, #tpu.memory_space<vmem>>, vector<36x128xf32>
    %cst_67 = arith.constant dense<0.000000e+00> : vector<256x128xf32>
    %30 = tpu.matmul %28, %29, %cst_67 {dimension_numbers = #tpu.dot_dimension_numbers<[1], [0], [0], [1], [0, 0, 1, 1], [], []>} : vector<256x36xf32>, vector<36x128xf32>, vector<256x128xf32> -> vector<256x128xf32>
    %c0_68 = arith.constant 0 : index
    %c0_69 = arith.constant 0 : index
    %c0_70 = arith.constant 0 : index
    %31 = vector.load %arg5[%c0_68, %c0_69, %c0_70] : memref<1x256x128xf32, #tpu.memory_space<vmem>>, vector<1x256x128xf32>
    %32 = vector.shape_cast %31 : vector<1x256x128xf32> to vector<256x128xf32>
    %33 = vector.shape_cast %30 : vector<256x128xf32> to vector<1x256x128xf32>
    tpu.vector_store %arg5[%c0_68, %c0_69, %c0_70], %33 {strides = array<i32>} : memref<1x256x128xf32, #tpu.memory_space<vmem>>, vector<1x256x128xf32>,
    %cst_71 = arith.constant dense<0.000000e+00> : vector<128xf32>
    %34 = vector.multi_reduction <add>, %30, %cst_71 [0] : vector<256x128xf32> to vector<128xf32>
    %35 = vector.shape_cast %34 : vector<128xf32> to vector<1x128xf32>
    %c0_72 = arith.constant 0 : index
    %c0_73 = arith.constant 0 : index
    %c0_74 = arith.constant 0 : index
    %36 = vector.load %arg6[%c0_72, %c0_73, %c0_74] : memref<1x1x128xf32, #tpu.memory_space<vmem>>, vector<1x1x128xf32>
    %37 = vector.shape_cast %36 : vector<1x1x128xf32> to vector<1x128xf32>
    %38 = vector.shape_cast %35 : vector<1x128xf32> to vector<1x1x128xf32>
    tpu.vector_store %arg6[%c0_72, %c0_73, %c0_74], %38 {strides = array<i32>} : memref<1x1x128xf32, #tpu.memory_space<vmem>>, vector<1x1x128xf32>,
    %39 = arith.mulf %30, %30 : vector<256x128xf32>
    %cst_75 = arith.constant dense<0.000000e+00> : vector<128xf32>
    %40 = vector.multi_reduction <add>, %39, %cst_75 [0] : vector<256x128xf32> to vector<128xf32>
    %41 = vector.shape_cast %40 : vector<128xf32> to vector<1x128xf32>
    %c0_76 = arith.constant 0 : index
    %c0_77 = arith.constant 0 : index
    %c0_78 = arith.constant 0 : index
    %42 = vector.load %arg7[%c0_76, %c0_77, %c0_78] : memref<1x1x128xf32, #tpu.memory_space<vmem>>, vector<1x1x128xf32>
    %43 = vector.shape_cast %42 : vector<1x1x128xf32> to vector<1x128xf32>
    %44 = vector.shape_cast %41 : vector<1x128xf32> to vector<1x1x128xf32>
    tpu.vector_store %arg7[%c0_76, %c0_77, %c0_78], %44 {strides = array<i32>} : memref<1x1x128xf32, #tpu.memory_space<vmem>>, vector<1x1x128xf32>,
    return
  }
  func.func @transform_0(%arg0: i32) -> (i32, i32, i32, i32) {
    %c0_i32 = arith.constant 0 : i32
    %c0_i32_0 = arith.constant 0 : i32
    %c0_i32_1 = arith.constant 0 : i32
    %c0_i32_2 = arith.constant 0 : i32
    return %arg0, %c0_i32, %c0_i32_0, %c0_i32_1 : i32, i32, i32, i32
  }
  func.func @transform_1(%arg0: i32) -> (i32, i32) {
    %c0_i32 = arith.constant 0 : i32
    %c0_i32_0 = arith.constant 0 : i32
    %c0_i32_1 = arith.constant 0 : i32
    return %c0_i32, %c0_i32_0 : i32, i32
  }
  func.func @transform_2(%arg0: i32) -> (i32, i32, i32) {
    %c0_i32 = arith.constant 0 : i32
    %c0_i32_0 = arith.constant 0 : i32
    %c0_i32_1 = arith.constant 0 : i32
    %c0_i32_2 = arith.constant 0 : i32
    return %c0_i32, %c0_i32_0, %c0_i32_1 : i32, i32, i32
  }
  func.func @transform_3(%arg0: i32) -> (i32, i32, i32) {
    %c0_i32 = arith.constant 0 : i32
    %c0_i32_0 = arith.constant 0 : i32
    %c0_i32_1 = arith.constant 0 : i32
    %c0_i32_2 = arith.constant 0 : i32
    return %c0_i32, %c0_i32_0, %c0_i32_1 : i32, i32, i32
  }
  func.func @transform_4(%arg0: i32) -> (i32, i32, i32) {
    %c0_i32 = arith.constant 0 : i32
    %c0_i32_0 = arith.constant 0 : i32
    %c0_i32_1 = arith.constant 0 : i32
    return %arg0, %c0_i32, %c0_i32_0 : i32, i32, i32
  }
  func.func @transform_5(%arg0: i32) -> (i32, i32, i32) {
    %c0_i32 = arith.constant 0 : i32
    %c0_i32_0 = arith.constant 0 : i32
    %c0_i32_1 = arith.constant 0 : i32
    return %arg0, %c0_i32, %c0_i32_0 : i32, i32, i32
  }
  func.func @transform_6(%arg0: i32) -> (i32, i32, i32) {
    %c0_i32 = arith.constant 0 : i32
    %c0_i32_0 = arith.constant 0 : i32
    %c0_i32_1 = arith.constant 0 : i32
    return %arg0, %c0_i32, %c0_i32_0 : i32, i32, i32
  }
}

</mosaic_0001>

<bundles_post_ra>
// kernel: tpu_custom_call.1
= control target key start
LH: loop header
LB: loop body
LE: loop exit
PB: predicated region body
PF: predicated region fallthrough
CT: control target
= control target key end

     0   :  { %12 = vsyncpa [#allocation5], 0  ;;  %s4195_s0 = inlined_call_operand.vmem [shape: f32[2,16,16,4], index: 0, kind: input, shape index: {}]   ;;  %s4196_s1 = inlined_call_operand.vmem [shape: f32[36,128], index: 1, kind: input, shape index: {}]   ;;  %s4197_s2 = inlined_call_operand.vmem [shape: f32[1,1,4], index: 2, kind: input, shape index: {}]   ;;  %s4198_s3 = inlined_call_operand.vmem [shape: f32[1,1,4], index: 3, kind: input, shape index: {}]   ;;  %s4199_s4 = inlined_call_operand.hbm [shape: f32[2,256,128], index: 4, kind: output, shape index: {0}]   ;;  %s4200_s5 = inlined_call_operand.hbm [shape: f32[2,1,128], index: 5, kind: output, shape index: {1}]   ;;  %s4201_s6 = inlined_call_operand.hbm [shape: f32[2,1,128], index: 6, kind: output, shape index: {2}]  }
   0x1   :  { %14 = vsyncpa [#allocation5 + $0x1], 0 }
   0x2   :  { %15 = vsyncpa [#allocation7], 0 }
   0x3   :  { %17 = vsyncpa [#allocation7 + $0x1], 0  ;;  %s3031_s21 = smov 0   ;;  %s3033_s22 = smov 0  }
   0x4   :  { %s3035_s2 = smov 0   ;;  %s3037_s3 = smov 0  }
   0x5 LB: > { %s3052_s23 = sadd.s32 4294967295, %s2981_s3   ;;  %s2652_s24 = sadd.s32 4294967294, %s2981_s3   ;;  %s2981_s3 = sphi %s3037_s3, %s4207_s3   ;;  %s2977_s2 = sphi %s3035_s2, %s4206_s2   ;;  %s2973_s22 = sphi %s3033_s22, %s4205_s22   ;;  %s2969_s21 = sphi %s3031_s21, %s4204_s21  }
   0x6   : > { %s3056_s25 = sadd.s32 1, %s2981_s3   ;;  %s119_s26 = sadd.s32 1, %s2977_s2 }
   0x7   : > { %s116_s27 = ssub.s32 %s2981_s3, %s3056_s25  ;;  %p129_p0 = scmp.ne.s32.totalorder %s2977_s2, %s2973_s22 }
   0x8   : > { %p117_p1 = scmp.eq.s32.totalorder %s116_s27, 0  ;;  %p130_p2 = scmp.eq.s32.totalorder %s3052_s23, 1 }
   0x9   : > { %p135_p3 = scmp.ne.s32.totalorder %s2973_s22, %s2969_s21  ;;  %p136_p4 = scmp.eq.s32.totalorder %s2652_s24, 1 }
   0xa   : > { %s3069_s28 = scalar_select %p117_p1, %s2977_s2, %s119_s26  }
   0xb   : > { %p3071_p5 = por %p130_p2, %p129_p0  ;;  %p3075_p6 = por %p136_p4, %p135_p3 }
   0xc   : > { %p2655_p7 = scmp.ge.s32.totalorder %s2981_s3, 1  ;;  %p223_p8 = scmp.lt.s32.totalorder %s2981_s3, 3 }
   0xe   : > { %p224_p9 = pnand %p2655_p7, %p223_p8 }
   0xf   : > { %p261_p10 = scmp.lt.s32.totalorder (!%p224_p9), %s3052_s23, 1  ;;  %s2984_s12 = smov (!%p224_p9), 4  }
  0x10   : > { %227 = sbr.rel (%p224_p9) target bundleno = 937 (0x3a9), region = 36  ;;  %s2985_s13 = smov (!%p224_p9), 8  }
  0x11   : > { %s2986_s14 = smov (!%p224_p9), 12   ;;  %s2987_s15 = smov (!%p224_p9), 16  }
  0x12   : > { %s2988_s16 = smov (!%p224_p9), 20   ;;  %s2989_s17 = smov (!%p224_p9), 24  }
  0x13   : > { %s2990_s20 = smov (!%p224_p9), 28   ;;  %s2991_s19 = smov (!%p224_p9), 32  }
  0x14   : > { %s2992_s9 = smov (!%p224_p9), [#allocation4]  }
  0x15   : > { %vm298_vm0 = vcmask 31744   ;;  %vm307_vm1 = vcmask 24576   ;;  %vm301_vm2 = vcmask 25600   ;;  %v2983_v0 = vmov 0.0   ;;  %s262_s7 = scalar_select %p261_p10, %s3052_s23, 1 }
  0x16   : > { %299 = vst.msk [vmem:[#allocation2] sm:$0xff] %vm298_vm0, %v2983_v0  ;;  %300 = vst.msk [vmem:[#allocation2 + $0x8] sm:$0xff] %vm298_vm0, %v2983_v0  ;;  %vm601_vm3 = vcmask 64544   ;;  %vm794_vm4 = vcmask 97344   ;;  %vm2120_vm5 = vcmask 1043456   ;;  %vm987_vm6 = vcmask 130144  }
  0x17   : > { %304 = vst.msk [vmem:[#allocation2 + $0x198] sm:$0xff] %vm298_vm0, %v2983_v0  ;;  %305 = vst.msk [vmem:[#allocation2 + $0x1a0] sm:$0xff] %vm298_vm0, %v2983_v0  ;;  %s2699_s8 = sshll.u32 %s262_s7, 8  ;;  %vm1180_vm7 = vcmask 162944   ;;  %vm1373_vm8 = vcmask 195744   ;;  %vm1567_vm9 = vcmask 228544  }
  0x18   : > { %309 = vst.msk [vmem:[#allocation2 + $0x18] sm:$0x1] %vm307_vm1, %v2983_v0  ;;  %310 = vst.msk [vmem:[#allocation2 + $0x30] sm:$0x1] %vm307_vm1, %v2983_v0  ;;  %s3130_s11 = scalar_lea.vmem %s4195_s0, %s2699_s8  ;;  %vm1760_vm10 = vcmask 261344   ;;  %vm1953_vm11 = vcmask 294144  }
  0x19   : > { %311 = vst.msk [vmem:[#allocation2 + $0x48] sm:$0x1] %vm307_vm1, %v2983_v0  ;;  %312 = vst.msk [vmem:[#allocation2 + $0x60] sm:$0x1] %vm307_vm1, %v2983_v0  ;;  %v266_v1 = vld [vmem:[%s3130_s11] sm:$0xff]  ;;  %v268_v2 = vld [vmem:[%s3130_s11 + $0x10] sm:$0xff] }
  0x1a   : > { %313 = vst.msk [vmem:[#allocation2 + $0x78] sm:$0x1] %vm307_vm1, %v2983_v0  ;;  %314 = vst.msk [vmem:[#allocation2 + $0x90] sm:$0x1] %vm307_vm1, %v2983_v0  ;;  %v267_v3 = vld [vmem:[%s3130_s11 + $0x8] sm:$0xff]  ;;  %v270_v4 = vld [vmem:[%s3130_s11 + $0x20] sm:$0xff] }
  0x1b   : > { %315 = vst.msk [vmem:[#allocation2 + $0xa8] sm:$0x1] %vm307_vm1, %v2983_v0  ;;  %316 = vst.msk [vmem:[#allocation2 + $0xc0] sm:$0x1] %vm307_vm1, %v2983_v0  ;;  %v269_v5 = vld [vmem:[%s3130_s11 + $0x18] sm:$0xff]  ;;  %v272_v6 = vld [vmem:[%s3130_s11 + $0x30] sm:$0xff] }
  0x1c   : > { %317 = vst.msk [vmem:[#allocation2 + $0xd8] sm:$0x1] %vm307_vm1, %v2983_v0  ;;  %318 = vst.msk [vmem:[#allocation2 + $0xf0] sm:$0x1] %vm307_vm1, %v2983_v0  ;;  %v271_v9 = vld [vmem:[%s3130_s11 + $0x28] sm:$0xff]  ;;  %v274_v10 = vld [vmem:[%s3130_s11 + $0x40] sm:$0xff] }
  0x1d   : > { %319 = vst.msk [vmem:[#allocation2 + $0x108] sm:$0x1] %vm307_vm1, %v2983_v0  ;;  %320 = vst.msk [vmem:[#allocation2 + $0x120] sm:$0x1] %vm307_vm1, %v2983_v0  ;;  %v441_v7 = vld [vmem:[#allocation2 + $0x1] sm:$0xff]  ;;  %v273_v11 = vld [vmem:[%s3130_s11 + $0x38] sm:$0xff] }
  0x1e   : > { %321 = vst.msk [vmem:[#allocation2 + $0x138] sm:$0x1] %vm307_vm1, %v2983_v0  ;;  %322 = vst.msk [vmem:[#allocation2 + $0x150] sm:$0x1] %vm307_vm1, %v2983_v0  ;;  %505 = vrot.lane.b32.xlu0 %v441_v7, %s2984_s12  ;;  %v276_v12 = vld [vmem:[%s3130_s11 + $0x50] sm:$0xff]  ;;  %v275_v13 = vld [vmem:[%s3130_s11 + $0x48] sm:$0xff] }
  0x1f   : > { %323 = vst.msk [vmem:[#allocation2 + $0x168] sm:$0x1] %vm307_vm1, %v2983_v0  ;;  %324 = vst.msk [vmem:[#allocation2 + $0x180] sm:$0x1] %vm307_vm1, %v2983_v0  ;;  %v278_v14 = vld [vmem:[%s3130_s11 + $0x60] sm:$0xff]  ;;  %v277_v15 = vld [vmem:[%s3130_s11 + $0x58] sm:$0xff] }
  0x20   : > { %327 = vst.msk [vmem:[#allocation2 + $0x29] sm:$0x1] %vm307_vm1, %v2983_v0  ;;  %328 = vst.msk [vmem:[#allocation2 + $0x41] sm:$0x1] %vm307_vm1, %v2983_v0  ;;  %v280_v16 = vld [vmem:[%s3130_s11 + $0x70] sm:$0xff]  ;;  %v279_v17 = vld [vmem:[%s3130_s11 + $0x68] sm:$0xff] }
  0x21   : > { %329 = vst.msk [vmem:[#allocation2 + $0x59] sm:$0x1] %vm307_vm1, %v2983_v0  ;;  %330 = vst.msk [vmem:[#allocation2 + $0x71] sm:$0x1] %vm307_vm1, %v2983_v0  ;;  %v282_v18 = vld [vmem:[%s3130_s11 + $0x80] sm:$0xff]  ;;  %v281_v19 = vld [vmem:[%s3130_s11 + $0x78] sm:$0xff] }
  0x22   : > { %331 = vst.msk [vmem:[#allocation2 + $0x89] sm:$0x1] %vm307_vm1, %v2983_v0  ;;  %332 = vst.msk [vmem:[#allocation2 + $0xa1] sm:$0x1] %vm307_vm1, %v2983_v0  ;;  %v284_v20 = vld [vmem:[%s3130_s11 + $0x90] sm:$0xff]  ;;  %v283_v21 = vld [vmem:[%s3130_s11 + $0x88] sm:$0xff] }
  0x23   : > { %333 = vst.msk [vmem:[#allocation2 + $0xb9] sm:$0x1] %vm307_vm1, %v2983_v0  ;;  %334 = vst.msk [vmem:[#allocation2 + $0xd1] sm:$0x1] %vm307_vm1, %v2983_v0  ;;  %v286_v22 = vld [vmem:[%s3130_s11 + $0xa0] sm:$0xff]  ;;  %v285_v23 = vld [vmem:[%s3130_s11 + $0x98] sm:$0xff] }
  0x24   : > { %335 = vst.msk [vmem:[#allocation2 + $0xe9] sm:$0x1] %vm307_vm1, %v2983_v0  ;;  %336 = vst.msk [vmem:[#allocation2 + $0x101] sm:$0x1] %vm307_vm1, %v2983_v0  ;;  %v288_v24 = vld [vmem:[%s3130_s11 + $0xb0] sm:$0xff]  ;;  %v287_v28 = vld [vmem:[%s3130_s11 + $0xa8] sm:$0xff] }
  0x25   : > { %337 = vst.msk [vmem:[#allocation2 + $0x119] sm:$0x1] %vm307_vm1, %v2983_v0  ;;  %338 = vst.msk [vmem:[#allocation2 + $0x131] sm:$0x1] %vm307_vm1, %v2983_v0  ;;  %v290_v29 = vld [vmem:[%s3130_s11 + $0xc0] sm:$0xff]  ;;  %v289_v33 = vld [vmem:[%s3130_s11 + $0xb8] sm:$0xff] }
  0x26   : > { %339 = vst.msk [vmem:[#allocation2 + $0x149] sm:$0x1] %vm307_vm1, %v2983_v0  ;;  %340 = vst.msk [vmem:[#allocation2 + $0x161] sm:$0x1] %vm307_vm1, %v2983_v0  ;;  %v292_v34 = vld [vmem:[%s3130_s11 + $0xd0] sm:$0xff]  ;;  %v291_v35 = vld [vmem:[%s3130_s11 + $0xc8] sm:$0xff] }
  0x27   : > { %341 = vst.msk [vmem:[#allocation2 + $0x179] sm:$0x1] %vm307_vm1, %v2983_v0  ;;  %342 = vst.msk [vmem:[#allocation2 + $0x191] sm:$0x1] %vm307_vm1, %v2983_v0  ;;  %v294_v36 = vld [vmem:[%s3130_s11 + $0xe0] sm:$0xff]  ;;  %v293_v37 = vld [vmem:[%s3130_s11 + $0xd8] sm:$0xff] }
  0x28   : > { %302 = vst.msk [vmem:[#allocation2 + $0x10] sm:$0x3] %vm301_vm2, %v2983_v0  ;;  %306 = vst.msk [vmem:[#allocation2 + $0x1a8] sm:$0x3] %vm301_vm2, %v2983_v0  ;;  %v295_v39 = vld [vmem:[%s3130_s11 + $0xe8] sm:$0xff]  ;;  %vm2023_vm12 = vcmask 293888  }
  0x29   : > { %308 = vst.msk [vmem:[#allocation2] sm:$0x1] %vm307_vm1, %v2983_v0  ;;  %325 = vst.msk [vmem:[#allocation2 + $0x198] sm:$0x1] %vm307_vm1, %v2983_v0  ;;  %v378_v46 = vld [vmem:[#allocation2 + $0x8] sm:$0xff]  ;;  %s2869_s10 = sshll.u32 %s2992_s9, 4  ;;  %s2870_s10 = int_to_ptr.vmem [resolvable:$false] %s2869_s10 }
  0x2a   : > { %326 = vst.msk [vmem:[#allocation2 + $0x11] sm:$0x1] %vm307_vm1, %v2983_v0  ;;  %343 = vst.msk [vmem:[#allocation2 + $0x1a9] sm:$0x1] %vm307_vm1, %v2983_v0 }
  0x2b   : > { %345 = vst.msk [vmem:[#allocation2 + $0x19] sm:$0xff] %vm298_vm0, %v266_v1  ;;  %347 = vst.msk [vmem:[#allocation2 + $0x31] sm:$0xff] %vm298_vm0, %v268_v2 }
  0x2c   : > { %346 = vst.msk [vmem:[#allocation2 + $0x21] sm:$0xff] %vm298_vm0, %v267_v3  ;;  %349 = vst.msk [vmem:[#allocation2 + $0x49] sm:$0xff] %vm298_vm0, %v270_v4 }
  0x2d   : > { %348 = vst.msk [vmem:[#allocation2 + $0x39] sm:$0xff] %vm298_vm0, %v269_v5  ;;  %351 = vst.msk [vmem:[#allocation2 + $0x61] sm:$0xff] %vm298_vm0, %v272_v6 }
  0x2e   : > { %350 = vst.msk [vmem:[#allocation2 + $0x51] sm:$0xff] %vm298_vm0, %v271_v9  ;;  %353 = vst.msk [vmem:[#allocation2 + $0x79] sm:$0xff] %vm298_vm0, %v274_v10 }
  0x2f   : > { %v442_v8 = vld [vmem:[#allocation2 + $0x9] sm:$0xff]  ;;  %352 = vst.msk [vmem:[#allocation2 + $0x69] sm:$0xff] %vm298_vm0, %v273_v11  ;;  %355 = vst.msk [vmem:[#allocation2 + $0x91] sm:$0xff] %vm298_vm0, %v276_v12 }
  0x30   : > { %354 = vst.msk [vmem:[#allocation2 + $0x81] sm:$0xff] %vm298_vm0, %v275_v13  ;;  %357 = vst.msk [vmem:[#allocation2 + $0xa9] sm:$0xff] %vm298_vm0, %v278_v14  ;;  %507 = vrot.lane.b32.xlu0 %v442_v8, %s2984_s12  ;;  %v377_v45 = vld [vmem:[#allocation2] sm:$0xff] }
  0x31   : > { %356 = vst.msk [vmem:[#allocation2 + $0x99] sm:$0xff] %vm298_vm0, %v277_v15  ;;  %359 = vst.msk [vmem:[#allocation2 + $0xc1] sm:$0xff] %vm298_vm0, %v280_v16 }
  0x32   : > { %358 = vst.msk [vmem:[#allocation2 + $0xb1] sm:$0xff] %vm298_vm0, %v279_v17  ;;  %361 = vst.msk [vmem:[#allocation2 + $0xd9] sm:$0xff] %vm298_vm0, %v282_v18  ;;  %v3175_v25 = vld [vmem:[#allocation2 + $0x19] sm:$0xff]  ;;  %v3177_v26 = vld [vmem:[#allocation2 + $0x31] sm:$0xff] }
  0x33   : > { %360 = vst.msk [vmem:[#allocation2 + $0xc9] sm:$0xff] %vm298_vm0, %v281_v19  ;;  %363 = vst.msk [vmem:[#allocation2 + $0xf1] sm:$0xff] %vm298_vm0, %v284_v20  ;;  %509 = vrot.lane.b32.xlu1 %v3175_v25, %s2984_s12  ;;  %v3184_v27 = vld [vmem:[#allocation2 + $0x21] sm:$0xff]  ;;  %v3192_v30 = vld [vmem:[#allocation2 + $0x49] sm:$0xff] }
  0x34   : > { %362 = vst.msk [vmem:[#allocation2 + $0xe1] sm:$0xff] %vm298_vm0, %v283_v21  ;;  %365 = vst.msk [vmem:[#allocation2 + $0x109] sm:$0xff] %vm298_vm0, %v286_v22  ;;  %513 = vrot.lane.b32.xlu0 %v3177_v26, %s2984_s12  ;;  %v3196_v31 = vld [vmem:[#allocation2 + $0x39] sm:$0xff]  ;;  %v3200_v32 = vld [vmem:[#allocation2 + $0x61] sm:$0xff] }
  0x35   : > { %364 = vst.msk [vmem:[#allocation2 + $0xf9] sm:$0xff] %vm298_vm0, %v285_v23  ;;  %367 = vst.msk [vmem:[#allocation2 + $0x121] sm:$0xff] %vm298_vm0, %v288_v24  ;;  %v3212_v38 = vld [vmem:[#allocation2 + $0x51] sm:$0xff]  ;;  %v3220_v40 = vld [vmem:[#allocation2 + $0x79] sm:$0xff] }
  0x36   : > { %366 = vst.msk [vmem:[#allocation2 + $0x111] sm:$0xff] %vm298_vm0, %v287_v28  ;;  %369 = vst.msk [vmem:[#allocation2 + $0x139] sm:$0xff] %vm298_vm0, %v290_v29  ;;  %v3224_v41 = vld [vmem:[#allocation2 + $0x69] sm:$0xff]  ;;  %v3228_v42 = vld [vmem:[#allocation2 + $0x91] sm:$0xff] }
  0x37   : > { %511 = vrot.lane.b32.xlu1 %v3184_v27, %s2984_s12  ;;  %368 = vst.msk [vmem:[#allocation2 + $0x129] sm:$0xff] %vm298_vm0, %v289_v33  ;;  %371 = vst.msk [vmem:[#allocation2 + $0x151] sm:$0xff] %vm298_vm0, %v292_v34  ;;  %v3232_v43 = vld [vmem:[#allocation2 + $0x81] sm:$0xff]  ;;  %v455_v44 = vld [vmem:[#allocation2 + $0xa9] sm:$0xff] }
  0x38   : > { %517 = vrot.lane.b32.xlu0 %v3192_v30, %s2984_s12  ;;  %370 = vst.msk [vmem:[#allocation2 + $0x141] sm:$0xff] %vm298_vm0, %v291_v35  ;;  %373 = vst.msk [vmem:[#allocation2 + $0x169] sm:$0xff] %vm298_vm0, %v294_v36  ;;  %v3239_v47 = vld [vmem:[#allocation2 + $0x99] sm:$0xff]  ;;  %v3247_v49 = vld [vmem:[#allocation2 + $0x30] sm:$0xff] }
  0x39   : > { %372 = vst.msk [vmem:[#allocation2 + $0x159] sm:$0xff] %vm298_vm0, %v293_v37  ;;  %374 = vst.msk [vmem:[#allocation2 + $0x171] sm:$0xff] %vm298_vm0, %v295_v39  ;;  %v3242_v48 = vld [vmem:[#allocation2 + $0x18] sm:$0xff]  ;;  %v457_v50 = vld [vmem:[#allocation2 + $0xc1] sm:$0xff] }
  0x3a   : > { %409 = vst.msk [vmem:[#allocation3] sm:$0xff] %vm298_vm0, %v377_v45  ;;  %410 = vst.msk [vmem:[#allocation3 + $0x8] sm:$0xff] %vm298_vm0, %v378_v46  ;;  %v3251_v51 = vld [vmem:[#allocation2 + $0x20] sm:$0xff]  ;;  %v3253_v52 = vld [vmem:[#allocation2 + $0x48] sm:$0xff] }
  0x3b   : > { %515 = vrot.lane.b32.xlu1 %v3196_v31, %s2984_s12  ;;  %411 = vst.msk [vmem:[#allocation3 + $0x10] sm:$0xff] %vm298_vm0, %v3242_v48  ;;  %413 = vst.msk [vmem:[#allocation3 + $0x20] sm:$0xff] %vm298_vm0, %v3247_v49  ;;  %v456_v53 = vld [vmem:[#allocation2 + $0xb1] sm:$0xff]  ;;  %v3263_v55 = vld [vmem:[#allocation2 + $0x60] sm:$0xff] }
  0x3c   : > { %521 = vrot.lane.b32.xlu0 %v3200_v32, %s2984_s12  ;;  %412 = vst.msk [vmem:[#allocation3 + $0x18] sm:$0xff] %vm298_vm0, %v3251_v51  ;;  %415 = vst.msk [vmem:[#allocation3 + $0x30] sm:$0xff] %vm298_vm0, %v3253_v52  ;;  %v3261_v54 = vld [vmem:[#allocation2 + $0x38] sm:$0xff]  ;;  %v3269_v57 = vld [vmem:[#allocation2 + $0x50] sm:$0xff] }
  0x3d   : > { %v459_v56 = vld [vmem:[#allocation2 + $0xd9] sm:$0xff]  ;;  %414 = vst.msk [vmem:[#allocation3 + $0x28] sm:$0xff] %vm298_vm0, %v3261_v54  ;;  %417 = vst.msk [vmem:[#allocation3 + $0x40] sm:$0xff] %vm298_vm0, %v3263_v55  ;;  %v3273_v59 = vld [vmem:[#allocation2 + $0x68] sm:$0xff] }
  0x3e   : > { %v3271_v58 = vld [vmem:[#allocation2 + $0x78] sm:$0xff]  ;;  %416 = vst.msk [vmem:[#allocation3 + $0x38] sm:$0xff] %vm298_vm0, %v3269_v57  ;;  %418 = vst.msk [vmem:[#allocation3 + $0x48] sm:$0xff] %vm298_vm0, %v3273_v59  ;;  %v3282_v60 = vld [vmem:[#allocation2 + $0x90] sm:$0xff] }
  0x3f   : > { %519 = vrot.lane.b32.xlu1 %v3212_v38, %s2984_s12  ;;  %419 = vst.msk [vmem:[#allocation3 + $0x50] sm:$0xff] %vm298_vm0, %v3271_v58  ;;  %v3284_v61 = vld [vmem:[#allocation2 + $0x80] sm:$0xff]  ;;  %v3286_v62 = vld [vmem:[#allocation2 + $0xa8] sm:$0xff]  ;;  %421 = vst.msk [vmem:[#allocation3 + $0x60] sm:$0xff] %vm298_vm0, %v3282_v60 }
  0x40   : > { %525 = vrot.lane.b32.xlu0 %v3220_v40, %s2984_s12  ;;  %v458_v63 = vld [vmem:[#allocation2 + $0xc9] sm:$0xff]  ;;  %420 = vst.msk [vmem:[#allocation3 + $0x58] sm:$0xff] %vm298_vm0, %v3284_v61  ;;  %423 = vst.msk [vmem:[#allocation3 + $0x70] sm:$0xff] %vm298_vm0, %v3286_v62  ;;  %v3294_v0 = vld [vmem:[#allocation2 + $0x98] sm:$0xff] }
  0x41   : > { %v3296_v1 = vld [vmem:[#allocation2 + $0xc0] sm:$0xff]  ;;  %v3298_v2 = vld [vmem:[#allocation2 + $0xb0] sm:$0xff]  ;;  %422 = vst.msk [vmem:[#allocation3 + $0x68] sm:$0xff] %vm298_vm0, %v3294_v0  ;;  %v3307_v3 = vld [vmem:[#allocation2 + $0xd8] sm:$0xff] }
  0x42   : > { %425 = vst.msk [vmem:[#allocation3 + $0x80] sm:$0xff] %vm298_vm0, %v3296_v1  ;;  %424 = vst.msk [vmem:[#allocation3 + $0x78] sm:$0xff] %vm298_vm0, %v3298_v2  ;;  %v3309_v4 = vld [vmem:[#allocation2 + $0xc8] sm:$0xff]  ;;  %v3311_v5 = vld [vmem:[#allocation2 + $0xf0] sm:$0xff] }
  0x43   : > { %523 = vrot.lane.b32.xlu1 %v3224_v41, %s2984_s12  ;;  %427 = vst.msk [vmem:[#allocation3 + $0x90] sm:$0xff] %vm298_vm0, %v3307_v3  ;;  %426 = vst.msk [vmem:[#allocation3 + $0x88] sm:$0xff] %vm298_vm0, %v3309_v4  ;;  %v3319_v6 = vld [vmem:[#allocation2 + $0xe0] sm:$0xff]  ;;  %v3321_v7 = vld [vmem:[#allocation2 + $0x108] sm:$0xff] }
  0x44   : > { %529 = vrot.lane.b32.xlu0 %v3228_v42, %s2984_s12  ;;  %429 = vst.msk [vmem:[#allocation3 + $0xa0] sm:$0xff] %vm298_vm0, %v3311_v5  ;;  %v3323_v8 = vld [vmem:[#allocation2 + $0xf8] sm:$0xff]  ;;  %428 = vst.msk [vmem:[#allocation3 + $0x98] sm:$0xff] %vm298_vm0, %v3319_v6  ;;  %v3332_v9 = vld [vmem:[#allocation2 + $0x120] sm:$0xff] }
  0x45   : > { %431 = vst.msk [vmem:[#allocation3 + $0xb0] sm:$0xff] %vm298_vm0, %v3321_v7  ;;  %430 = vst.msk [vmem:[#allocation3 + $0xa8] sm:$0xff] %vm298_vm0, %v3323_v8  ;;  %v3334_v10 = vld [vmem:[#allocation2 + $0x110] sm:$0xff]  ;;  %v403_v12 = vld [vmem:[#allocation2 + $0x138] sm:$0xff] }
  0x46   : > { %v461_v11 = vld [vmem:[#allocation2 + $0xf1] sm:$0xff]  ;;  %433 = vst.msk [vmem:[#allocation3 + $0xc0] sm:$0xff] %vm298_vm0, %v3332_v9  ;;  %432 = vst.msk [vmem:[#allocation3 + $0xb8] sm:$0xff] %vm298_vm0, %v3334_v10  ;;  %v460_v13 = vld [vmem:[#allocation2 + $0xe1] sm:$0xff] }
  0x47   : > { %527 = vrot.lane.b32.xlu1 %v3232_v43, %s2984_s12  ;;  %435 = vst.msk [vmem:[#allocation3 + $0xd0] sm:$0xff] %vm298_vm0, %v403_v12  ;;  %v3342_v14 = vld [vmem:[#allocation2 + $0x128] sm:$0xff]  ;;  %v405_v16 = vld [vmem:[#allocation2 + $0x150] sm:$0xff]  ;;  %v462_v17 = vld [vmem:[#allocation2 + $0xf9] sm:$0xff] }
  0x48   : > { %533 = vrot.lane.b32.xlu0 %v455_v44, %s2984_s12  ;;  %434 = vst.msk [vmem:[#allocation3 + $0xc8] sm:$0xff] %vm298_vm0, %v3342_v14  ;;  %v463_v15 = vld [vmem:[#allocation2 + $0x109] sm:$0xff]  ;;  %437 = vst.msk [vmem:[#allocation3 + $0xe0] sm:$0xff] %vm298_vm0, %v405_v16  ;;  %v404_v18 = vld [vmem:[#allocation2 + $0x140] sm:$0xff] }
  0x49   : > { %436 = vst.msk [vmem:[#allocation3 + $0xd8] sm:$0xff] %vm298_vm0, %v404_v18  ;;  %v465_v19 = vld [vmem:[#allocation2 + $0x121] sm:$0xff]  ;;  %v464_v21 = vld [vmem:[#allocation2 + $0x111] sm:$0xff]  ;;  %v467_v23 = vld [vmem:[#allocation2 + $0x139] sm:$0xff] }
  0x4a   : > { %v407_v20 = vld [vmem:[#allocation2 + $0x168] sm:$0xff]  ;;  %v406_v22 = vld [vmem:[#allocation2 + $0x158] sm:$0xff]  ;;  %v408_v28 = vld [vmem:[#allocation2 + $0x170] sm:$0xff] }
  0x4b   : > { %531 = vrot.lane.b32.xlu1 %v3239_v47, %s2984_s12  ;;  %439 = vst.msk [vmem:[#allocation3 + $0xf0] sm:$0xff] %vm298_vm0, %v407_v20  ;;  %438 = vst.msk [vmem:[#allocation3 + $0xe8] sm:$0xff] %vm298_vm0, %v406_v22  ;;  %v466_v24 = vld [vmem:[#allocation2 + $0x129] sm:$0xff]  ;;  %v469_v29 = vld [vmem:[#allocation2 + $0x151] sm:$0xff] }
  0x4c   : > { %537 = vrot.lane.b32.xlu0 %v457_v50, %s2984_s12  ;;  %440 = vst.msk [vmem:[#allocation3 + $0xf8] sm:$0xff] %vm298_vm0, %v408_v28  ;;  %v468_v33 = vld [vmem:[#allocation2 + $0x141] sm:$0xff]  ;;  %v471_v34 = vld [vmem:[#allocation2 + $0x169] sm:$0xff]  ;;  %v470_v35 = vld [vmem:[#allocation2 + $0x159] sm:$0xff] }
  0x4d   : > { %v634_v36 = vld [vmem:[#allocation2 + $0x2] sm:$0xff]  ;;  %v472_v37 = vld [vmem:[#allocation2 + $0x171] sm:$0xff]  ;;  %v3364_v39 = vld [vmem:[#allocation2 + $0x1a] sm:$0xff] }
  0x4e   : > { %v635_v44 = vld [vmem:[#allocation2 + $0xa] sm:$0xff]  ;;  %v3369_v45 = vld [vmem:[#allocation2 + $0x32] sm:$0xff]  ;;  %v3372_v46 = vld [vmem:[#allocation2 + $0x22] sm:$0xff] }
  0x4f   : > { %535 = vrot.lane.b32.xlu1 %v456_v53, %s2984_s12  ;;  %v3376_v50 = vld [vmem:[#allocation2 + $0x4a] sm:$0xff]  ;;  %v3380_v53 = vld [vmem:[#allocation2 + $0x3a] sm:$0xff]  ;;  %v3416_v18 = vld [vmem:[#allocation2 + $0xc2] sm:$0xff] }
  0x50   : > { %541 = vrot.lane.b32.xlu0 %v459_v56, %s2984_s12  ;;  %v3384_v56 = vld [vmem:[#allocation2 + $0x62] sm:$0xff]  ;;  %v3396_v12 = vld [vmem:[#allocation2 + $0x6a] sm:$0xff]  ;;  %v652_v20 = vld [vmem:[#allocation2 + $0xda] sm:$0xff] }
  0x51   : > { %v3408_v16 = vld [vmem:[#allocation2 + $0xaa] sm:$0xff]  ;;  %v654_v22 = vld [vmem:[#allocation2 + $0xf2] sm:$0xff]  ;;  %v655_v28 = vld [vmem:[#allocation2 + $0xfa] sm:$0xff] }
  0x53   : > { %539 = vrot.lane.b32.xlu1 %v458_v63, %s2984_s12  ;;  %v3388_v63 = vld [vmem:[#allocation2 + $0x52] sm:$0xff] }
  0x54   : > { %545 = vrot.lane.b32.xlu0 %v461_v11, %s2984_s12  ;;  %v3392_v11 = vld [vmem:[#allocation2 + $0x7a] sm:$0xff] }
  0x57   : > { %543 = vrot.lane.b32.xlu1 %v460_v13, %s2984_s12  ;;  %v3400_v13 = vld [vmem:[#allocation2 + $0x92] sm:$0xff] }
  0x58   : > { %549 = vrot.lane.b32.xlu0 %v463_v15, %s2984_s12  ;;  %v3404_v15 = vld [vmem:[#allocation2 + $0x82] sm:$0xff] }
  0x5b   : > { %547 = vrot.lane.b32.xlu1 %v462_v17, %s2984_s12  ;;  %v3412_v17 = vld [vmem:[#allocation2 + $0x9a] sm:$0xff] }
  0x5c   : > { %553 = vrot.lane.b32.xlu0 %v465_v19, %s2984_s12  ;;  %v3420_v19 = vld [vmem:[#allocation2 + $0xb2] sm:$0xff] }
  0x5f   : > { %551 = vrot.lane.b32.xlu1 %v464_v21, %s2984_s12  ;;  %v3426_v21 = vld [vmem:[#allocation2 + $0xca] sm:$0xff] }
  0x60   : > { %557 = vrot.lane.b32.xlu0 %v467_v23, %s2984_s12  ;;  %v653_v23 = vld [vmem:[#allocation2 + $0xe2] sm:$0xff] }
  0x63   : > { %555 = vrot.lane.b32.xlu1 %v466_v24, %s2984_s12  ;;  %v656_v24 = vld [vmem:[#allocation2 + $0x10a] sm:$0xff] }
  0x64   : > { %561 = vrot.lane.b32.xlu0 %v469_v29, %s2984_s12  ;;  %v658_v29 = vld [vmem:[#allocation2 + $0x122] sm:$0xff] }
  0x67   : > { %559 = vrot.lane.b32.xlu1 %v468_v33, %s2984_s12  ;;  %v657_v33 = vld [vmem:[#allocation2 + $0x112] sm:$0xff] }
  0x68   : > { %565 = vrot.lane.b32.xlu0 %v471_v34, %s2984_s12  ;;  %v660_v34 = vld [vmem:[#allocation2 + $0x13a] sm:$0xff] }
  0x6b   : > { %563 = vrot.lane.b32.xlu1 %v470_v35, %s2984_s12 }
  0x6c   : > { %698 = vrot.lane.b32.xlu0 %v634_v36, %s2985_s13  ;;  %v659_v36 = vld [vmem:[#allocation2 + $0x12a] sm:$0xff] }
  0x6f   : > { %567 = vrot.lane.b32.xlu1 %v472_v37, %s2984_s12  ;;  %v662_v37 = vld [vmem:[#allocation2 + $0x152] sm:$0xff]  ;;  %s2871_s12 = scalar_lea.vmem %s2870_s10, 8192 }
  0x70   : > { %702 = vrot.lane.b32.xlu0 %v3364_v39, %s2985_s13 }
  0x73   : > { %700 = vrot.lane.b32.xlu1 %v635_v44, %s2985_s13 }
  0x74   : > { %706 = vrot.lane.b32.xlu0 %v3369_v45, %s2985_s13 }
  0x77   : > { %704 = vrot.lane.b32.xlu1 %v3372_v46, %s2985_s13 }
  0x78   : > { %710 = vrot.lane.b32.xlu0 %v3376_v50, %s2985_s13 }
  0x7b   : > { %708 = vrot.lane.b32.xlu1 %v3380_v53, %s2985_s13 }
  0x7c   : > { %714 = vrot.lane.b32.xlu0 %v3384_v56, %s2985_s13 }
  0x7f   : > { %712 = vrot.lane.b32.xlu1 %v3388_v63, %s2985_s13 }
  0x80   : > { %718 = vrot.lane.b32.xlu0 %v3392_v11, %s2985_s13 }
  0x83   : > { %716 = vrot.lane.b32.xlu1 %v3396_v12, %s2985_s13 }
  0x84   : > { %722 = vrot.lane.b32.xlu0 %v3400_v13, %s2985_s13 }
  0x87   : > { %720 = vrot.lane.b32.xlu1 %v3404_v15, %s2985_s13 }
  0x88   : > { %726 = vrot.lane.b32.xlu0 %v3408_v16, %s2985_s13 }
  0x8b   : > { %724 = vrot.lane.b32.xlu1 %v3412_v17, %s2985_s13 }
  0x8c   : > { %730 = vrot.lane.b32.xlu0 %v3416_v18, %s2985_s13 }
  0x8f   : > { %728 = vrot.lane.b32.xlu1 %v3420_v19, %s2985_s13 }
  0x90   : > { %734 = vrot.lane.b32.xlu0 %v652_v20, %s2985_s13  ;;  %v506_v35 = vpop.permute.xlu0 %505  ;;  %v661_v20 = vld [vmem:[#allocation2 + $0x142] sm:$0xff] }
  0x91   : > { %602 = vst.msk [vmem:[#allocation3] sm:$0xff] %vm601_vm3, %v506_v35 }
  0x93   : > { %732 = vrot.lane.b32.xlu1 %v3426_v21, %s2985_s13 }
  0x94   : > { %738 = vrot.lane.b32.xlu0 %v654_v22, %s2985_s13 }
  0x97   : > { %736 = vrot.lane.b32.xlu1 %v653_v23, %s2985_s13  ;;  %v664_v23 = vld [vmem:[#allocation2 + $0x16a] sm:$0xff] }
  0x98   : > { %742 = vrot.lane.b32.xlu0 %v656_v24, %s2985_s13 }
  0x9b   : > { %740 = vrot.lane.b32.xlu1 %v655_v28, %s2985_s13  ;;  %v663_v28 = vld [vmem:[#allocation2 + $0x15a] sm:$0xff] }
  0x9c   : > { %746 = vrot.lane.b32.xlu0 %v658_v29, %s2985_s13 }
  0x9f   : > { %744 = vrot.lane.b32.xlu1 %v657_v33, %s2985_s13 }
  0xa0   : > { %750 = vrot.lane.b32.xlu0 %v660_v34, %s2985_s13  ;;  %v665_v34 = vld [vmem:[#allocation2 + $0x172] sm:$0xff] }
  0xa2   : > { %v508_v44 = vpop.permute.xlu0 %507 }
  0xa3   : > { %748 = vrot.lane.b32.xlu1 %v659_v36, %s2985_s13  ;;  %603 = vst.msk [vmem:[#allocation3 + $0x8] sm:$0xff] %vm601_vm3, %v508_v44 }
  0xa4   : > { %754 = vrot.lane.b32.xlu0 %v662_v37, %s2985_s13 }
  0xa5   : > { %v510_v22 = vpop.permute.xlu1 %509 }
  0xa6   : > { %604 = vst.msk [vmem:[#allocation3 + $0x10] sm:$0xff] %vm601_vm3, %v510_v22  ;;  %v514_v24 = vpop.permute.xlu0 %513 }
  0xa7   : > { %752 = vrot.lane.b32.xlu1 %v661_v20, %s2985_s13  ;;  %606 = vst.msk [vmem:[#allocation3 + $0x20] sm:$0xff] %vm601_vm3, %v514_v24 }
  0xa8   : > { %758 = vrot.lane.b32.xlu0 %v664_v23, %s2985_s13 }
  0xa9   : > { %v512_v29 = vpop.permute.xlu1 %511 }
  0xaa   : > { %605 = vst.msk [vmem:[#allocation3 + $0x18] sm:$0xff] %vm601_vm3, %v512_v29  ;;  %v518_v33 = vpop.permute.xlu0 %517 }
  0xab   : > { %756 = vrot.lane.b32.xlu1 %v663_v28, %s2985_s13  ;;  %608 = vst.msk [vmem:[#allocation3 + $0x30] sm:$0xff] %vm601_vm3, %v518_v33 }
  0xac   : > { %891 = vrot.lane.b32.xlu0 %v3242_v48, %s2986_s14 }
  0xad   : > { %v516_v35 = vpop.permute.xlu1 %515 }
  0xae   : > { %607 = vst.msk [vmem:[#allocation3 + $0x28] sm:$0xff] %vm601_vm3, %v516_v35  ;;  %v522_v36 = vpop.permute.xlu0 %521 }
  0xaf   : > { %760 = vrot.lane.b32.xlu1 %v665_v34, %s2985_s13  ;;  %610 = vst.msk [vmem:[#allocation3 + $0x40] sm:$0xff] %vm601_vm3, %v522_v36 }
  0xb0   : > { %895 = vrot.lane.b32.xlu0 %v3247_v49, %s2986_s14 }
  0xb1   : > { %v520_v37 = vpop.permute.xlu1 %519 }
  0xb2   : > { %609 = vst.msk [vmem:[#allocation3 + $0x38] sm:$0xff] %vm601_vm3, %v520_v37  ;;  %v526_v44 = vpop.permute.xlu0 %525 }
  0xb3   : > { %893 = vrot.lane.b32.xlu1 %v3251_v51, %s2986_s14  ;;  %612 = vst.msk [vmem:[#allocation3 + $0x50] sm:$0xff] %vm601_vm3, %v526_v44 }
  0xb4   : > { %899 = vrot.lane.b32.xlu0 %v3253_v52, %s2986_s14 }
  0xb5   : > { %v524_v48 = vpop.permute.xlu1 %523 }
  0xb6   : > { %611 = vst.msk [vmem:[#allocation3 + $0x48] sm:$0xff] %vm601_vm3, %v524_v48  ;;  %v530_v20 = vpop.permute.xlu0 %529 }
  0xb7   : > { %897 = vrot.lane.b32.xlu1 %v3261_v54, %s2986_s14  ;;  %614 = vst.msk [vmem:[#allocation3 + $0x60] sm:$0xff] %vm601_vm3, %v530_v20 }
  0xb8   : > { %903 = vrot.lane.b32.xlu0 %v3263_v55, %s2986_s14 }
  0xb9   : > { %v528_v22 = vpop.permute.xlu1 %527 }
  0xba   : > { %613 = vst.msk [vmem:[#allocation3 + $0x58] sm:$0xff] %vm601_vm3, %v528_v22  ;;  %v534_v51 = vpop.permute.xlu0 %533 }
  0xbb   : > { %901 = vrot.lane.b32.xlu1 %v3269_v57, %s2986_s14  ;;  %616 = vst.msk [vmem:[#allocation3 + $0x70] sm:$0xff] %vm601_vm3, %v534_v51 }
  0xbc   : > { %907 = vrot.lane.b32.xlu0 %v3271_v58, %s2986_s14 }
  0xbd   : > { %v532_v23 = vpop.permute.xlu1 %531 }
  0xbe   : > { %615 = vst.msk [vmem:[#allocation3 + $0x68] sm:$0xff] %vm601_vm3, %v532_v23  ;;  %v538_v24 = vpop.permute.xlu0 %537 }
  0xbf   : > { %905 = vrot.lane.b32.xlu1 %v3273_v59, %s2986_s14  ;;  %618 = vst.msk [vmem:[#allocation3 + $0x80] sm:$0xff] %vm601_vm3, %v538_v24 }
  0xc0   : > { %911 = vrot.lane.b32.xlu0 %v3282_v60, %s2986_s14 }
  0xc1   : > { %v536_v28 = vpop.permute.xlu1 %535 }
  0xc2   : > { %617 = vst.msk [vmem:[#allocation3 + $0x78] sm:$0xff] %vm601_vm3, %v536_v28  ;;  %v542_v29 = vpop.permute.xlu0 %541 }
  0xc3   : > { %909 = vrot.lane.b32.xlu1 %v3284_v61, %s2986_s14  ;;  %620 = vst.msk [vmem:[#allocation3 + $0x90] sm:$0xff] %vm601_vm3, %v542_v29  ;;  %v2020_v29 = vld [vmem:[%s4196_s1 + $0x10] sm:$0xff] }
  0xc4   : > { %915 = vrot.lane.b32.xlu0 %v3286_v62, %s2986_s14 }
  0xc5   : > { %v540_v33 = vpop.permute.xlu1 %539 }
  0xc6   : > { %619 = vst.msk [vmem:[#allocation3 + $0x88] sm:$0xff] %vm601_vm3, %v540_v33  ;;  %v546_v34 = vpop.permute.xlu0 %545 }
  0xc7   : > { %913 = vrot.lane.b32.xlu1 %v3294_v0, %s2986_s14  ;;  %622 = vst.msk [vmem:[#allocation3 + $0xa0] sm:$0xff] %vm601_vm3, %v546_v34 }
  0xc8   : > { %919 = vrot.lane.b32.xlu0 %v3296_v1, %s2986_s14 }
  0xc9   : > { %v544_v35 = vpop.permute.xlu1 %543 }
  0xca   : > { %621 = vst.msk [vmem:[#allocation3 + $0x98] sm:$0xff] %vm601_vm3, %v544_v35  ;;  %v550_v36 = vpop.permute.xlu0 %549  ;;  %v2018_v35 = vld [vmem:[%s4196_s1] sm:$0xff] }
  0xcb   : > { %917 = vrot.lane.b32.xlu1 %v3298_v2, %s2986_s14  ;;  %624 = vst.msk [vmem:[#allocation3 + $0xb0] sm:$0xff] %vm601_vm3, %v550_v36 }
  0xcc   : > { %923 = vrot.lane.b32.xlu0 %v3307_v3, %s2986_s14 }
  0xcd   : > { %v548_v37 = vpop.permute.xlu1 %547 }
  0xce   : > { %623 = vst.msk [vmem:[#allocation3 + $0xa8] sm:$0xff] %vm601_vm3, %v548_v37  ;;  %v554_v44 = vpop.permute.xlu0 %553 }
  0xcf   : > { %921 = vrot.lane.b32.xlu1 %v3309_v4, %s2986_s14  ;;  %626 = vst.msk [vmem:[#allocation3 + $0xc0] sm:$0xff] %vm601_vm3, %v554_v44 }
  0xd0   : > { %927 = vrot.lane.b32.xlu0 %v3311_v5, %s2986_s14 }
  0xd1   : > { %v552_v48 = vpop.permute.xlu1 %551 }
  0xd2   : > { %625 = vst.msk [vmem:[#allocation3 + $0xb8] sm:$0xff] %vm601_vm3, %v552_v48  ;;  %v558_v20 = vpop.permute.xlu0 %557 }
  0xd3   : > { %925 = vrot.lane.b32.xlu1 %v3319_v6, %s2986_s14  ;;  %628 = vst.msk [vmem:[#allocation3 + $0xd0] sm:$0xff] %vm601_vm3, %v558_v20 }
  0xd4   : > { %1084 = vrot.lane.b32.xlu0 %v3175_v25, %s2987_s15 }
  0xd5   : > { %v556_v22 = vpop.permute.xlu1 %555 }
  0xd6   : > { %627 = vst.msk [vmem:[#allocation3 + $0xc8] sm:$0xff] %vm601_vm3, %v556_v22  ;;  %v562_v51 = vpop.permute.xlu0 %561 }
  0xd7   : > { %929 = vrot.lane.b32.xlu1 %v3323_v8, %s2986_s14  ;;  %630 = vst.msk [vmem:[#allocation3 + $0xe0] sm:$0xff] %vm601_vm3, %v562_v51 }
  0xd8   : > { %1277 = vrot.lane.b32.xlu0 %v3364_v39, %s2988_s16  ;;  %v2021_v39 = vld [vmem:[%s4196_s1 + $0x18] sm:$0xff] }
  0xd9   : > { %v560_v23 = vpop.permute.xlu1 %559 }
  0xda   : > { %629 = vst.msk [vmem:[#allocation3 + $0xd8] sm:$0xff] %vm601_vm3, %v560_v23  ;;  %v566_v24 = vpop.permute.xlu0 %565 }
  0xdb   : > { %1086 = vrot.lane.b32.xlu1 %v3184_v27, %s2987_s15  ;;  %632 = vst.msk [vmem:[#allocation3 + $0xf0] sm:$0xff] %vm601_vm3, %v566_v24  ;;  %v2022_v27 = vld [vmem:[%s4196_s1 + $0x20] sm:$0xf] }
  0xdc   : > { %1471 = vrot.lane.b32.xlu0 %v3247_v49, %s2989_s17  ;;  %2738 = vmatprep.subr.msk.mxu0 %vm2120_vm5, %v2022_v27 }
  0xdd   : > { %v564_v25 = vpop.permute.xlu1 %563  ;;  %2739 = vmatpush3.msk.msra.mxu0 %vm2120_vm5, %v2022_v27  ;;  %2796 = vmatprep.subr.msk.mxu1 %vm2120_vm5, %v2022_v27 }
  0xde   : > { %631 = vst.msk [vmem:[#allocation3 + $0xe8] sm:$0xff] %vm601_vm3, %v564_v25  ;;  %v699_v28 = vpop.permute.xlu0 %698  ;;  %2740 = vmatprep.subr.mxu0 %v2021_v39  ;;  %2801 = vmatpush3.msk.msra.mxu1 %vm2120_vm5, %v2022_v27 }
  0xdf   : > { %1279 = vrot.lane.b32.xlu1 %v3372_v46, %s2988_s16  ;;  %795 = vst.msk [vmem:[#allocation3] sm:$0xff] %vm794_vm4, %v699_v28  ;;  %2741 = vmatpush3.msra.mxu0 %v2021_v39 }
  0xe0   : > { %1664 = vrot.lane.b32.xlu0 %v3177_v26, %s2990_s20  ;;  %2742 = vmatprep.subr.mxu0 %v2020_v29 }
  0xe1   : > { %v568_v49 = vpop.permute.xlu1 %567  ;;  %2743 = vmatpush3.msra.mxu0 %v2020_v29  ;;  %2797 = vmatprep.subr.mxu1 %v2021_v39 }
  0xe2   : > { %633 = vst.msk [vmem:[#allocation3 + $0xf8] sm:$0xff] %vm601_vm3, %v568_v49  ;;  %v703_v46 = vpop.permute.xlu0 %702  ;;  %2802 = vmatpush3.msra.mxu1 %v2021_v39 }
  0xe3   : > { %1473 = vrot.lane.b32.xlu1 %v3261_v54, %s2989_s17  ;;  %797 = vst.msk [vmem:[#allocation3 + $0x10] sm:$0xff] %vm794_vm4, %v703_v46  ;;  %v2019_v54 = vld [vmem:[%s4196_s1 + $0x8] sm:$0xff]  ;;  %2798 = vmatprep.subr.mxu1 %v2020_v29 }
  0xe4   : > { %1666 = vrot.lane.b32.xlu0 %v3196_v31, %s2990_s20  ;;  %2744 = vmatprep.subr.mxu0 %v2019_v54 }
  0xe5   : > { %v701_v33 = vpop.permute.xlu1 %700  ;;  %2745 = vmatpush3.msra.mxu0 %v2019_v54  ;;  %2803 = vmatpush3.msra.mxu1 %v2020_v29 }
  0xe6   : > { %796 = vst.msk [vmem:[#allocation3 + $0x8] sm:$0xff] %vm794_vm4, %v701_v33  ;;  %v707_v34 = vpop.permute.xlu0 %706  ;;  %2746 = vmatprep.subr.mxu0 %v2018_v35  ;;  %2799 = vmatprep.subr.mxu1 %v2019_v54 }
  0xe7   : > { %1088 = vrot.lane.b32.xlu1 %v3177_v26, %s2987_s15  ;;  %799 = vst.msk [vmem:[#allocation3 + $0x20] sm:$0xff] %vm794_vm4, %v707_v34  ;;  %2747 = vmatpush3.msra.mxu0 %v2018_v35 }
  0xe8   : > { %1090 = vrot.lane.b32.xlu0 %v3196_v31, %s2987_s15  ;;  %2804 = vmatpush3.msra.mxu1 %v2019_v54 }
  0xe9   : > { %v705_v36 = vpop.permute.xlu1 %704  ;;  %2800 = vmatprep.subr.mxu1 %v2018_v35 }
  0xea   : > { %798 = vst.msk [vmem:[#allocation3 + $0x18] sm:$0xff] %vm794_vm4, %v705_v36  ;;  %v711_v37 = vpop.permute.xlu0 %710  ;;  %2805 = vmatpush3.msra.mxu1 %v2018_v35  ;;  %v1610_v35 = vld [vmem:[#allocation2 + $0xa9] sm:$0xff] }
  0xeb   : > { %1857 = vrot.lane.b32.xlu1 %v3369_v45, %s2991_s19  ;;  %801 = vst.msk [vmem:[#allocation3 + $0x30] sm:$0xff] %vm794_vm4, %v711_v37 }
  0xec   : > { %1859 = vrot.lane.b32.xlu0 %v3380_v53, %s2991_s19 }
  0xed   : > { %v709_v26 = vpop.permute.xlu1 %708 }
  0xee   : > { %800 = vst.msk [vmem:[#allocation3 + $0x28] sm:$0xff] %vm794_vm4, %v709_v26  ;;  %v715_v31 = vpop.permute.xlu0 %714 }
  0xef   : > { %1281 = vrot.lane.b32.xlu1 %v3369_v45, %s2988_s16  ;;  %803 = vst.msk [vmem:[#allocation3 + $0x40] sm:$0xff] %vm794_vm4, %v715_v31 }
  0xf0   : > { %1475 = vrot.lane.b32.xlu0 %v3253_v52, %s2989_s17 }
  0xf1   : > { %v713_v44 = vpop.permute.xlu1 %712 }
  0xf2   : > { %802 = vst.msk [vmem:[#allocation3 + $0x38] sm:$0xff] %vm794_vm4, %v713_v44  ;;  %v719_v48 = vpop.permute.xlu0 %718 }
  0xf3   : > { %1283 = vrot.lane.b32.xlu1 %v3380_v53, %s2988_s16  ;;  %805 = vst.msk [vmem:[#allocation3 + $0x50] sm:$0xff] %vm794_vm4, %v719_v48 }
  0xf4   : > { %1668 = vrot.lane.b32.xlu0 %v3192_v30, %s2990_s20 }
  0xf5   : > { %v717_v20 = vpop.permute.xlu1 %716 }
  0xf6   : > { %804 = vst.msk [vmem:[#allocation3 + $0x48] sm:$0xff] %vm794_vm4, %v717_v20  ;;  %v723_v45 = vpop.permute.xlu0 %722 }
  0xf7   : > { %1477 = vrot.lane.b32.xlu1 %v3269_v57, %s2989_s17  ;;  %807 = vst.msk [vmem:[#allocation3 + $0x60] sm:$0xff] %vm794_vm4, %v723_v45  ;;  %v1612_v45 = vld [vmem:[#allocation2 + $0xc1] sm:$0xff] }
  0xf8   : > { %1670 = vrot.lane.b32.xlu0 %v3212_v38, %s2990_s20 }
  0xf9   : > { %v721_v52 = vpop.permute.xlu1 %720 }
  0xfa   : > { %806 = vst.msk [vmem:[#allocation3 + $0x58] sm:$0xff] %vm794_vm4, %v721_v52  ;;  %v727_v53 = vpop.permute.xlu0 %726 }
  0xfb   : > { %1092 = vrot.lane.b32.xlu1 %v3192_v30, %s2987_s15  ;;  %809 = vst.msk [vmem:[#allocation3 + $0x70] sm:$0xff] %vm794_vm4, %v727_v53 }
  0xfc   : > { %1094 = vrot.lane.b32.xlu0 %v3212_v38, %s2987_s15 }
  0xfd   : > { %v725_v22 = vpop.permute.xlu1 %724 }
  0xfe   : > { %808 = vst.msk [vmem:[#allocation3 + $0x68] sm:$0xff] %vm794_vm4, %v725_v22  ;;  %v731_v57 = vpop.permute.xlu0 %730 }
  0xff   : > { %1861 = vrot.lane.b32.xlu1 %v3376_v50, %s2991_s19  ;;  %811 = vst.msk [vmem:[#allocation3 + $0x80] sm:$0xff] %vm794_vm4, %v731_v57 }
 0x100   : > { %1863 = vrot.lane.b32.xlu0 %v3388_v63, %s2991_s19 }
 0x101   : > { %v729_v51 = vpop.permute.xlu1 %728 }
 0x102   : > { %810 = vst.msk [vmem:[#allocation3 + $0x78] sm:$0xff] %vm794_vm4, %v729_v51  ;;  %v735_v30 = vpop.permute.xlu0 %734 }
 0x103   : > { %1285 = vrot.lane.b32.xlu1 %v3376_v50, %s2988_s16  ;;  %813 = vst.msk [vmem:[#allocation3 + $0x90] sm:$0xff] %vm794_vm4, %v735_v30 }
 0x104   : > { %1479 = vrot.lane.b32.xlu0 %v3263_v55, %s2989_s17 }
 0x105   : > { %v733_v38 = vpop.permute.xlu1 %732 }
 0x106   : > { %812 = vst.msk [vmem:[#allocation3 + $0x88] sm:$0xff] %vm794_vm4, %v733_v38  ;;  %v739_v23 = vpop.permute.xlu0 %738 }
 0x107   : > { %1287 = vrot.lane.b32.xlu1 %v3388_v63, %s2988_s16  ;;  %815 = vst.msk [vmem:[#allocation3 + $0xa0] sm:$0xff] %vm794_vm4, %v739_v23 }
 0x108   : > { %1672 = vrot.lane.b32.xlu0 %v3200_v32, %s2990_s20 }
 0x109   : > { %v737_v24 = vpop.permute.xlu1 %736 }
 0x10a   : > { %814 = vst.msk [vmem:[#allocation3 + $0x98] sm:$0xff] %vm794_vm4, %v737_v24  ;;  %v743_v50 = vpop.permute.xlu0 %742  ;;  %v1228_v24 = vld [vmem:[#allocation2 + $0xca] sm:$0xff] }
 0x10b   : > { %1481 = vrot.lane.b32.xlu1 %v3273_v59, %s2989_s17  ;;  %817 = vst.msk [vmem:[#allocation3 + $0xb0] sm:$0xff] %vm794_vm4, %v743_v50  ;;  %v1614_v50 = vld [vmem:[#allocation2 + $0xd9] sm:$0xff] }
 0x10c   : > { %1674 = vrot.lane.b32.xlu0 %v3224_v41, %s2990_s20 }
 0x10d   : > { %v741_v55 = vpop.permute.xlu1 %740 }
 0x10e   : > { %816 = vst.msk [vmem:[#allocation3 + $0xa8] sm:$0xff] %vm794_vm4, %v741_v55  ;;  %v747_v63 = vpop.permute.xlu0 %746 }
 0x10f   : > { %1096 = vrot.lane.b32.xlu1 %v3200_v32, %s2987_s15  ;;  %819 = vst.msk [vmem:[#allocation3 + $0xc0] sm:$0xff] %vm794_vm4, %v747_v63  ;;  %v1615_v63 = vld [vmem:[#allocation2 + $0xe1] sm:$0xff] }
 0x110   : > { %1098 = vrot.lane.b32.xlu0 %v3224_v41, %s2987_s15 }
 0x111   : > { %v745_v25 = vpop.permute.xlu1 %744 }
 0x112   : > { %818 = vst.msk [vmem:[#allocation3 + $0xb8] sm:$0xff] %vm794_vm4, %v745_v25  ;;  %v751_v59 = vpop.permute.xlu0 %750 }
 0x113   : > { %1865 = vrot.lane.b32.xlu1 %v3384_v56, %s2991_s19  ;;  %821 = vst.msk [vmem:[#allocation3 + $0xd0] sm:$0xff] %vm794_vm4, %v751_v59 }
 0x114   : > { %1867 = vrot.lane.b32.xlu0 %v3396_v12, %s2991_s19 }
 0x115   : > { %v749_v28 = vpop.permute.xlu1 %748 }
 0x116   : > { %820 = vst.msk [vmem:[#allocation3 + $0xc8] sm:$0xff] %vm794_vm4, %v749_v28  ;;  %v755_v32 = vpop.permute.xlu0 %754  ;;  %v1807_v28 = vld [vmem:[#allocation2 + $0xda] sm:$0xff] }
 0x117   : > { %1289 = vrot.lane.b32.xlu1 %v3384_v56, %s2988_s16  ;;  %823 = vst.msk [vmem:[#allocation3 + $0xe0] sm:$0xff] %vm794_vm4, %v755_v32 }
 0x118   : > { %1483 = vrot.lane.b32.xlu0 %v3271_v58, %s2989_s17 }
 0x119   : > { %v753_v41 = vpop.permute.xlu1 %752 }
 0x11a   : > { %822 = vst.msk [vmem:[#allocation3 + $0xd8] sm:$0xff] %vm794_vm4, %v753_v41  ;;  %v759_v27 = vpop.permute.xlu0 %758  ;;  %v1808_v41 = vld [vmem:[#allocation2 + $0xe2] sm:$0xff] }
 0x11b   : > { %1291 = vrot.lane.b32.xlu1 %v3396_v12, %s2988_s16  ;;  %825 = vst.msk [vmem:[#allocation3 + $0xf0] sm:$0xff] %vm794_vm4, %v759_v27 }
 0x11c   : > { %1676 = vrot.lane.b32.xlu0 %v3220_v40, %s2990_s20 }
 0x11d   : > { %v757_v49 = vpop.permute.xlu1 %756 }
 0x11e   : > { %824 = vst.msk [vmem:[#allocation3 + $0xe8] sm:$0xff] %vm794_vm4, %v757_v49  ;;  %v892_v56 = vpop.permute.xlu0 %891 }
 0x11f   : > { %1485 = vrot.lane.b32.xlu1 %v3284_v61, %s2989_s17  ;;  %988 = vst.msk [vmem:[#allocation3] sm:$0xff] %vm987_vm6, %v892_v56 }
 0x120   : > { %1678 = vrot.lane.b32.xlu0 %v3232_v43, %s2990_s20 }
 0x121   : > { %v761_v58 = vpop.permute.xlu1 %760 }
 0x122   : > { %826 = vst.msk [vmem:[#allocation3 + $0xf8] sm:$0xff] %vm794_vm4, %v761_v58  ;;  %v896_v12 = vpop.permute.xlu0 %895 }
 0x123   : > { %1100 = vrot.lane.b32.xlu1 %v3220_v40, %s2987_s15  ;;  %990 = vst.msk [vmem:[#allocation3 + $0x10] sm:$0xff] %vm987_vm6, %v896_v12 }
 0x124   : > { %1102 = vrot.lane.b32.xlu0 %v3232_v43, %s2987_s15 }
 0x125   : > { %v894_v39 = vpop.permute.xlu1 %893 }
 0x126   : > { %989 = vst.msk [vmem:[#allocation3 + $0x8] sm:$0xff] %vm987_vm6, %v894_v39  ;;  %v900_v61 = vpop.permute.xlu0 %899  ;;  %v1616_v39 = vld [vmem:[#allocation2 + $0xf1] sm:$0xff] }
 0x127   : > { %1869 = vrot.lane.b32.xlu1 %v3392_v11, %s2991_s19  ;;  %992 = vst.msk [vmem:[#allocation3 + $0x20] sm:$0xff] %vm987_vm6, %v900_v61 }
 0x128   : > { %1871 = vrot.lane.b32.xlu0 %v3404_v15, %s2991_s19 }
 0x129   : > { %v898_v46 = vpop.permute.xlu1 %897 }
 0x12a   : > { %991 = vst.msk [vmem:[#allocation3 + $0x18] sm:$0xff] %vm987_vm6, %v898_v46  ;;  %v904_v40 = vpop.permute.xlu0 %903  ;;  %v296_v46 = vld [vmem:[%s3130_s11 + $0xf0] sm:$0xff] }
 0x12b   : > { %1293 = vrot.lane.b32.xlu1 %v3392_v11, %s2988_s16  ;;  %994 = vst.msk [vmem:[#allocation3 + $0x30] sm:$0xff] %vm987_vm6, %v904_v40 }
 0x12c   : > { %1487 = vrot.lane.b32.xlu0 %v3282_v60, %s2989_s17  ;;  %375 = vst.msk [vmem:[#allocation2 + $0x181] sm:$0xff] %vm298_vm0, %v296_v46 }
 0x12d   : > { %v902_v43 = vpop.permute.xlu1 %901 }
 0x12e   : > { %993 = vst.msk [vmem:[#allocation3 + $0x28] sm:$0xff] %vm987_vm6, %v902_v43  ;;  %v908_v29 = vpop.permute.xlu0 %907  ;;  %v1617_v43 = vld [vmem:[#allocation2 + $0xf9] sm:$0xff] }
 0x12f   : > { %1295 = vrot.lane.b32.xlu1 %v3404_v15, %s2988_s16  ;;  %996 = vst.msk [vmem:[#allocation3 + $0x40] sm:$0xff] %vm987_vm6, %v908_v29  ;;  %v297_v29 = vld [vmem:[%s3130_s11 + $0xf8] sm:$0xff]  ;;  %s3957_s11 = sand.u32 1, %s2973_s22  }
 0x130   : > { %1680 = vrot.lane.b32.xlu0 %v3228_v42, %s2990_s20  ;;  %376 = vst.msk [vmem:[#allocation2 + $0x189] sm:$0xff] %vm298_vm0, %v297_v29  ;;  %v1816_v29 = vld [vmem:[#allocation2 + $0x142] sm:$0xff]  ;;  %s2490_s7 = scalar_lea.sflag [#allocation5], %s3957_s11 }
 0x131   : > { %v906_v33 = vpop.permute.xlu1 %905 }
 0x132   : > { %995 = vst.msk [vmem:[#allocation3 + $0x38] sm:$0xff] %vm987_vm6, %v906_v33  ;;  %v912_v11 = vpop.permute.xlu0 %911 }
 0x133   : > { %1489 = vrot.lane.b32.xlu1 %v3294_v0, %s2989_s17  ;;  %998 = vst.msk [vmem:[#allocation3 + $0x50] sm:$0xff] %vm987_vm6, %v912_v11 }
 0x134   : > { %1682 = vrot.lane.b32.xlu0 %v3239_v47, %s2990_s20 }
 0x135   : > { %v910_v60 = vpop.permute.xlu1 %909 }
 0x136   : > { %997 = vst.msk [vmem:[#allocation3 + $0x48] sm:$0xff] %vm987_vm6, %v910_v60  ;;  %v916_v15 = vpop.permute.xlu0 %915  ;;  %v1809_v60 = vld [vmem:[#allocation2 + $0xf2] sm:$0xff] }
 0x137   : > { %1104 = vrot.lane.b32.xlu1 %v3228_v42, %s2987_s15  ;;  %1000 = vst.msk [vmem:[#allocation3 + $0x60] sm:$0xff] %vm987_vm6, %v916_v15 }
 0x138   : > { %1106 = vrot.lane.b32.xlu0 %v3239_v47, %s2987_s15 }
 0x139   : > { %v914_v54 = vpop.permute.xlu1 %913 }
 0x13a   : > { %999 = vst.msk [vmem:[#allocation3 + $0x58] sm:$0xff] %vm987_vm6, %v914_v54  ;;  %v920_v0 = vpop.permute.xlu0 %919 }
 0x13b   : > { %1873 = vrot.lane.b32.xlu1 %v3400_v13, %s2991_s19  ;;  %1002 = vst.msk [vmem:[#allocation3 + $0x70] sm:$0xff] %vm987_vm6, %v920_v0 }
 0x13c   : > { %1875 = vrot.lane.b32.xlu0 %v3412_v17, %s2991_s19 }
 0x13d   : > { %v918_v34 = vpop.permute.xlu1 %917 }
 0x13e   : > { %1001 = vst.msk [vmem:[#allocation3 + $0x68] sm:$0xff] %vm987_vm6, %v918_v34  ;;  %v924_v42 = vpop.permute.xlu0 %923 }
 0x13f   : > { %1297 = vrot.lane.b32.xlu1 %v3400_v13, %s2988_s16  ;;  %1004 = vst.msk [vmem:[#allocation3 + $0x80] sm:$0xff] %vm987_vm6, %v924_v42  ;;  %v1611_v13 = vld [vmem:[#allocation2 + $0xb1] sm:$0xff] }
 0x140   : > { %1491 = vrot.lane.b32.xlu0 %v3286_v62, %s2989_s17 }
 0x141   : > { %v922_v47 = vpop.permute.xlu1 %921 }
 0x142   : > { %1003 = vst.msk [vmem:[#allocation3 + $0x78] sm:$0xff] %vm987_vm6, %v922_v47  ;;  %v928_v36 = vpop.permute.xlu0 %927 }
 0x143   : > { %1299 = vrot.lane.b32.xlu1 %v3412_v17, %s2988_s16  ;;  %1006 = vst.msk [vmem:[#allocation3 + $0x90] sm:$0xff] %vm987_vm6, %v928_v36 }
 0x144   : > { %1684 = vrot.lane.b32.xlu0 %v1610_v35, %s2990_s20 }
 0x145   : > { %v926_v37 = vpop.permute.xlu1 %925 }
 0x146   : > { %1005 = vst.msk [vmem:[#allocation3 + $0x88] sm:$0xff] %vm987_vm6, %v926_v37  ;;  %v1085_v26 = vpop.permute.xlu0 %1084 }
 0x147   : > { %1493 = vrot.lane.b32.xlu1 %v3298_v2, %s2989_s17  ;;  %1181 = vst.msk [vmem:[#allocation3] sm:$0xff] %vm1180_vm7, %v1085_v26  ;;  %v1618_v26 = vld [vmem:[#allocation2 + $0x109] sm:$0xff] }
 0x148   : > { %1686 = vrot.lane.b32.xlu0 %v1611_v13, %s2990_s20 }
 0x149   : > { %v930_v62 = vpop.permute.xlu1 %929 }
 0x14a   : > { %1007 = vst.msk [vmem:[#allocation3 + $0x98] sm:$0xff] %vm987_vm6, %v930_v62  ;;  %v1278_v17 = vpop.permute.xlu0 %1277 }
 0x14b   : > { %1108 = vrot.lane.b32.xlu1 %v1610_v35, %s2987_s15  ;;  %1374 = vst.msk [vmem:[#allocation3] sm:$0xff] %vm1373_vm8, %v1278_v17  ;;  %v1619_v17 = vld [vmem:[#allocation2 + $0x111] sm:$0xff] }
 0x14c   : > { %1110 = vrot.lane.b32.xlu0 %v1611_v13, %s2987_s15 }
 0x14d   : > { %v1087_v31 = vpop.permute.xlu1 %1086 }
 0x14e   : > { %1182 = vst.msk [vmem:[#allocation3 + $0x8] sm:$0xff] %vm1180_vm7, %v1087_v31  ;;  %v1472_v2 = vpop.permute.xlu0 %1471 }
 0x14f   : > { %1877 = vrot.lane.b32.xlu1 %v3408_v16, %s2991_s19  ;;  %1568 = vst.msk [vmem:[#allocation3] sm:$0xff] %vm1567_vm9, %v1472_v2 }
 0x150   : > { %1879 = vrot.lane.b32.xlu0 %v3420_v19, %s2991_s19 }
 0x151   : > { %v1280_v44 = vpop.permute.xlu1 %1279 }
 0x152   : > { %1375 = vst.msk [vmem:[#allocation3 + $0x8] sm:$0xff] %vm1373_vm8, %v1280_v44  ;;  %v1665_v48 = vpop.permute.xlu0 %1664 }
 0x153   : > { %1301 = vrot.lane.b32.xlu1 %v3408_v16, %s2988_s16  ;;  %1761 = vst.msk [vmem:[#allocation3] sm:$0xff] %vm1760_vm10, %v1665_v48  ;;  %v1613_v16 = vld [vmem:[#allocation2 + $0xc9] sm:$0xff] }
 0x154   : > { %1495 = vrot.lane.b32.xlu0 %v3296_v1, %s2989_s17 }
 0x155   : > { %v1474_v20 = vpop.permute.xlu1 %1473 }
 0x156   : > { %1569 = vst.msk [vmem:[#allocation3 + $0x8] sm:$0xff] %vm1567_vm9, %v1474_v20  ;;  %v1667_v52 = vpop.permute.xlu0 %1666  ;;  %v1812_v20 = vld [vmem:[#allocation2 + $0x112] sm:$0xff] }
 0x157   : > { %1303 = vrot.lane.b32.xlu1 %v3420_v19, %s2988_s16  ;;  %1762 = vst.msk [vmem:[#allocation3 + $0x8] sm:$0xff] %vm1760_vm10, %v1667_v52 }
 0x158   : > { %1688 = vrot.lane.b32.xlu0 %v1612_v45, %s2990_s20 }
 0x159   : > { %v1089_v53 = vpop.permute.xlu1 %1088 }
 0x15a   : > { %1183 = vst.msk [vmem:[#allocation3 + $0x10] sm:$0xff] %vm1180_vm7, %v1089_v53  ;;  %v1091_v22 = vpop.permute.xlu0 %1090 }
 0x15b   : > { %1497 = vrot.lane.b32.xlu1 %v3309_v4, %s2989_s17  ;;  %1184 = vst.msk [vmem:[#allocation3 + $0x18] sm:$0xff] %vm1180_vm7, %v1091_v22 }
 0x15c   : > { %1690 = vrot.lane.b32.xlu0 %v1613_v16, %s2990_s20 }
 0x15d   : > { %v1858_v1 = vpop.permute.xlu1 %1857 }
 0x15e   : > { %1954 = vst.msk [vmem:[#allocation3] sm:$0xff] %vm1953_vm11, %v1858_v1  ;;  %v1860_v19 = vpop.permute.xlu0 %1859 }
 0x15f   : > { %1112 = vrot.lane.b32.xlu1 %v1612_v45, %s2987_s15  ;;  %1955 = vst.msk [vmem:[#allocation3 + $0x8] sm:$0xff] %vm1953_vm11, %v1860_v19  ;;  %v849_v19 = vld [vmem:[#allocation2 + $0x120] sm:$0xff] }
 0x160   : > { %1114 = vrot.lane.b32.xlu0 %v1613_v16, %s2987_s15 }
 0x161   : > { %v1282_v57 = vpop.permute.xlu1 %1281 }
 0x162   : > { %1376 = vst.msk [vmem:[#allocation3 + $0x10] sm:$0xff] %vm1373_vm8, %v1282_v57  ;;  %v1476_v51 = vpop.permute.xlu0 %1475 }
 0x163   : > { %1881 = vrot.lane.b32.xlu1 %v3416_v18, %s2991_s19  ;;  %1570 = vst.msk [vmem:[#allocation3 + $0x10] sm:$0xff] %vm1567_vm9, %v1476_v51 }
 0x164   : > { %1883 = vrot.lane.b32.xlu0 %v3426_v21, %s2991_s19 }
 0x165   : > { %v1284_v4 = vpop.permute.xlu1 %1283  ;;  %v1986_v30 = vld [vmem:[#allocation3] sm:$0xff] }
 0x166   : > { %1377 = vst.msk [vmem:[#allocation3 + $0x18] sm:$0xff] %vm1373_vm8, %v1284_v4  ;;  %2748 = vmatprep.mubr.msk.f32.mxu0 %vm2023_vm12, %v1986_v30  ;;  %v1669_v38 = vpop.permute.xlu0 %1668  ;;  %v1987_v23 = vld [vmem:[#allocation3 + $0x8] sm:$0xff]  ;;  %v1621_v30 = vld [vmem:[#allocation2 + $0x129] sm:$0xff] }
 0x167   : > { %1305 = vrot.lane.b32.xlu1 %v3416_v18, %s2988_s16  ;;  %1763 = vst.msk [vmem:[#allocation3 + $0x10] sm:$0xff] %vm1760_vm10, %v1669_v38  ;;  %2749 = vmatmul.mubr.msk.f32.vlgmr.msra.gmra.mxu0 %vm2023_vm12, %v1987_v23 }
 0x168   : > { %1499 = vrot.lane.b32.xlu0 %v3307_v3, %s2989_s17 }
 0x169   : > { %v1478_v21 = vpop.permute.xlu1 %1477 }
 0x16a   : > { %1571 = vst.msk [vmem:[#allocation3 + $0x18] sm:$0xff] %vm1567_vm9, %v1478_v21  ;;  %v1671_v55 = vpop.permute.xlu0 %1670 }
 0x16b   : > { %1307 = vrot.lane.b32.xlu1 %v1228_v24, %s2988_s16  ;;  %1764 = vst.msk [vmem:[#allocation3 + $0x18] sm:$0xff] %vm1760_vm10, %v1671_v55 }
 0x16c   : > { %1692 = vrot.lane.b32.xlu0 %v1614_v50, %s2990_s20 }
 0x16d   : > { %v1093_v18 = vpop.permute.xlu1 %1092 }
 0x16e   : > { %1185 = vst.msk [vmem:[#allocation3 + $0x20] sm:$0xff] %vm1180_vm7, %v1093_v18  ;;  %v1095_v25 = vpop.permute.xlu0 %1094  ;;  %v1814_v18 = vld [vmem:[#allocation2 + $0x12a] sm:$0xff] }
 0x16f   : > { %1501 = vrot.lane.b32.xlu1 %v3319_v6, %s2989_s17  ;;  %1186 = vst.msk [vmem:[#allocation3 + $0x28] sm:$0xff] %vm1180_vm7, %v1095_v25 }
 0x170   : > { %1694 = vrot.lane.b32.xlu0 %v1615_v63, %s2990_s20 }
 0x171   : > { %v1862_v3 = vpop.permute.xlu1 %1861 }
 0x172   : > { %1956 = vst.msk [vmem:[#allocation3 + $0x10] sm:$0xff] %vm1953_vm11, %v1862_v3  ;;  %v1864_v59 = vpop.permute.xlu0 %1863  ;;  %v1429_v3 = vld [vmem:[#allocation2 + $0x138] sm:$0xff] }
 0x173   : > { %1116 = vrot.lane.b32.xlu1 %v1614_v50, %s2987_s15  ;;  %1957 = vst.msk [vmem:[#allocation3 + $0x18] sm:$0xff] %vm1953_vm11, %v1864_v59  ;;  %v1813_v50 = vld [vmem:[#allocation2 + $0x122] sm:$0xff] }
 0x174   : > { %1118 = vrot.lane.b32.xlu0 %v1615_v63, %s2987_s15 }
 0x175   : > { %v1286_v32 = vpop.permute.xlu1 %1285 }
 0x176   : > { %1378 = vst.msk [vmem:[#allocation3 + $0x20] sm:$0xff] %vm1373_vm8, %v1286_v32  ;;  %v1480_v6 = vpop.permute.xlu0 %1479  ;;  %v1430_v32 = vld [vmem:[#allocation2 + $0x140] sm:$0xff] }
 0x177   : > { %1885 = vrot.lane.b32.xlu1 %v1807_v28, %s2991_s19  ;;  %1572 = vst.msk [vmem:[#allocation3 + $0x20] sm:$0xff] %vm1567_vm9, %v1480_v6 }
 0x178   : > { %1887 = vrot.lane.b32.xlu0 %v1808_v41, %s2991_s19 }
 0x179   : > { %v1288_v27 = vpop.permute.xlu1 %1287  ;;  %v1988_v49 = vld [vmem:[#allocation3 + $0x10] sm:$0xff] }
 0x17a   : > { %1379 = vst.msk [vmem:[#allocation3 + $0x28] sm:$0xff] %vm1373_vm8, %v1288_v27  ;;  %2751 = vmatprep.mubr.msk.f32.mxu0 %vm2023_vm12, %v1988_v49  ;;  %v1673_v56 = vpop.permute.xlu0 %1672  ;;  %v1989_v58 = vld [vmem:[#allocation3 + $0x18] sm:$0xff]  ;;  %v1622_v49 = vld [vmem:[#allocation2 + $0x139] sm:$0xff] }
 0x17b   : > { %1309 = vrot.lane.b32.xlu1 %v1807_v28, %s2988_s16  ;;  %1765 = vst.msk [vmem:[#allocation3 + $0x20] sm:$0xff] %vm1760_vm10, %v1673_v56  ;;  %2752 = vmatmul.mubr.msk.f32.gmra.mxu0 %vm2023_vm12, %v1989_v58 }
 0x17c   : > { %1503 = vrot.lane.b32.xlu0 %v3311_v5, %s2989_s17 }
 0x17d   : > { %v1482_v12 = vpop.permute.xlu1 %1481 }
 0x17e   : > { %1573 = vst.msk [vmem:[#allocation3 + $0x28] sm:$0xff] %vm1567_vm9, %v1482_v12  ;;  %v1675_v61 = vpop.permute.xlu0 %1674  ;;  %v1623_v12 = vld [vmem:[#allocation2 + $0x141] sm:$0xff] }
 0x17f   : > { %1311 = vrot.lane.b32.xlu1 %v1808_v41, %s2988_s16  ;;  %1766 = vst.msk [vmem:[#allocation3 + $0x28] sm:$0xff] %vm1760_vm10, %v1675_v61 }
 0x180   : > { %1696 = vrot.lane.b32.xlu0 %v1616_v39, %s2990_s20 }
 0x181   : > { %v1097_v40 = vpop.permute.xlu1 %1096 }
 0x182   : > { %1187 = vst.msk [vmem:[#allocation3 + $0x30] sm:$0xff] %vm1180_vm7, %v1097_v40  ;;  %v1099_v5 = vpop.permute.xlu0 %1098 }
 0x183   : > { %1505 = vrot.lane.b32.xlu1 %v3323_v8, %s2989_s17  ;;  %1188 = vst.msk [vmem:[#allocation3 + $0x38] sm:$0xff] %vm1180_vm7, %v1099_v5  ;;  %v1810_v8 = vld [vmem:[#allocation2 + $0xfa] sm:$0xff] }
 0x184   : > { %1698 = vrot.lane.b32.xlu0 %v1617_v43, %s2990_s20 }
 0x185   : > { %v1866_v33 = vpop.permute.xlu1 %1865 }
 0x186   : > { %1958 = vst.msk [vmem:[#allocation3 + $0x20] sm:$0xff] %vm1953_vm11, %v1866_v33  ;;  %v1868_v11 = vpop.permute.xlu0 %1867 }
 0x187   : > { %1120 = vrot.lane.b32.xlu1 %v1616_v39, %s2987_s15  ;;  %1959 = vst.msk [vmem:[#allocation3 + $0x28] sm:$0xff] %vm1953_vm11, %v1868_v11 }
 0x188   : > { %1122 = vrot.lane.b32.xlu0 %v1617_v43, %s2987_s15  ;;  %v1815_v43 = vld [vmem:[#allocation2 + $0x13a] sm:$0xff] }
 0x189   : > { %v1290_v15 = vpop.permute.xlu1 %1289 }
 0x18a   : > { %1380 = vst.msk [vmem:[#allocation3 + $0x30] sm:$0xff] %vm1373_vm8, %v1290_v15  ;;  %v1484_v54 = vpop.permute.xlu0 %1483 }
 0x18b   : > { %1889 = vrot.lane.b32.xlu1 %v1809_v60, %s2991_s19  ;;  %1574 = vst.msk [vmem:[#allocation3 + $0x30] sm:$0xff] %vm1567_vm9, %v1484_v54  ;;  %v1432_v54 = vld [vmem:[#allocation2 + $0x158] sm:$0xff] }
 0x18c   : > { %1891 = vrot.lane.b32.xlu0 %v1810_v8, %s2991_s19 }
 0x18d   : > { %v1292_v0 = vpop.permute.xlu1 %1291  ;;  %v1990_v34 = vld [vmem:[#allocation3 + $0x20] sm:$0xff] }
 0x18e   : > { %1381 = vst.msk [vmem:[#allocation3 + $0x38] sm:$0xff] %vm1373_vm8, %v1292_v0  ;;  %2754 = vmatprep.mubr.msk.f32.mxu0 %vm2023_vm12, %v1990_v34  ;;  %v1677_v42 = vpop.permute.xlu0 %1676  ;;  %v1991_v47 = vld [vmem:[#allocation3 + $0x28] sm:$0xff] }
 0x18f   : > { %1313 = vrot.lane.b32.xlu1 %v1809_v60, %s2988_s16  ;;  %1767 = vst.msk [vmem:[#allocation3 + $0x30] sm:$0xff] %vm1760_vm10, %v1677_v42  ;;  %2755 = vmatmul.mubr.msk.f32.gmra.mxu0 %vm2023_vm12, %v1991_v47  ;;  %v1431_v60 = vld [vmem:[#allocation2 + $0x150] sm:$0xff] }
 0x190   : > { %1507 = vrot.lane.b32.xlu0 %v3321_v7, %s2989_s17 }
 0x191   : > { %v1486_v35 = vpop.permute.xlu1 %1485 }
 0x192   : > { %1575 = vst.msk [vmem:[#allocation3 + $0x38] sm:$0xff] %vm1567_vm9, %v1486_v35  ;;  %v1679_v36 = vpop.permute.xlu0 %1678 }
 0x193   : > { %1315 = vrot.lane.b32.xlu1 %v1810_v8, %s2988_s16  ;;  %1768 = vst.msk [vmem:[#allocation3 + $0x38] sm:$0xff] %vm1760_vm10, %v1679_v36  ;;  %v1624_v36 = vld [vmem:[#allocation2 + $0x151] sm:$0xff] }
 0x194   : > { %1509 = vrot.lane.b32.xlu0 %v3334_v10, %s2989_s17 }
 0x195   : > { %v1101_v37 = vpop.permute.xlu1 %1100 }
 0x196   : > { %1189 = vst.msk [vmem:[#allocation3 + $0x40] sm:$0xff] %vm1180_vm7, %v1101_v37  ;;  %v1103_v13 = vpop.permute.xlu0 %1102 }
 0x197   : > { %931 = vrot.lane.b32.xlu1 %v3321_v7, %s2986_s14  ;;  %1190 = vst.msk [vmem:[#allocation3 + $0x48] sm:$0xff] %vm1180_vm7, %v1103_v13  ;;  %v1625_v13 = vld [vmem:[#allocation2 + $0x159] sm:$0xff] }
 0x198   : > { %933 = vrot.lane.b32.xlu0 %v3334_v10, %s2986_s14  ;;  %v1811_v10 = vld [vmem:[#allocation2 + $0x10a] sm:$0xff] }
 0x199   : > { %v1870_v62 = vpop.permute.xlu1 %1869 }
 0x19a   : > { %1960 = vst.msk [vmem:[#allocation3 + $0x30] sm:$0xff] %vm1953_vm11, %v1870_v62  ;;  %v1872_v31 = vpop.permute.xlu0 %1871 }
 0x19b   : > { %1700 = vrot.lane.b32.xlu1 %v1618_v26, %s2990_s20  ;;  %1961 = vst.msk [vmem:[#allocation3 + $0x38] sm:$0xff] %vm1953_vm11, %v1872_v31  ;;  %v1817_v31 = vld [vmem:[#allocation2 + $0x152] sm:$0xff] }
 0x19c   : > { %1702 = vrot.lane.b32.xlu0 %v1619_v17, %s2990_s20 }
 0x19d   : > { %v1294_v2 = vpop.permute.xlu1 %1293 }
 0x19e   : > { %1382 = vst.msk [vmem:[#allocation3 + $0x40] sm:$0xff] %vm1373_vm8, %v1294_v2  ;;  %v1488_v7 = vpop.permute.xlu0 %1487 }
 0x19f   : > { %1124 = vrot.lane.b32.xlu1 %v1618_v26, %s2987_s15  ;;  %1576 = vst.msk [vmem:[#allocation3 + $0x40] sm:$0xff] %vm1567_vm9, %v1488_v7  ;;  %v1818_v7 = vld [vmem:[#allocation2 + $0x15a] sm:$0xff] }
 0x1a0   : > { %1126 = vrot.lane.b32.xlu0 %v1619_v17, %s2987_s15 }
 0x1a1   : > { %v1296_v44 = vpop.permute.xlu1 %1295  ;;  %v1992_v48 = vld [vmem:[#allocation3 + $0x30] sm:$0xff] }
 0x1a2   : > { %1383 = vst.msk [vmem:[#allocation3 + $0x48] sm:$0xff] %vm1373_vm8, %v1296_v44  ;;  %2757 = vmatprep.mubr.msk.f32.mxu0 %vm2023_vm12, %v1992_v48  ;;  %v1681_v45 = vpop.permute.xlu0 %1680  ;;  %v1993_v52 = vld [vmem:[#allocation3 + $0x38] sm:$0xff] }
 0x1a3   : > { %1893 = vrot.lane.b32.xlu1 %v1811_v10, %s2991_s19  ;;  %1769 = vst.msk [vmem:[#allocation3 + $0x40] sm:$0xff] %vm1760_vm10, %v1681_v45  ;;  %2758 = vmatmul.mubr.msk.f32.gmra.mxu0 %vm2023_vm12, %v1993_v52  ;;  %v1433_v48 = vld [vmem:[#allocation2 + $0x168] sm:$0xff] }
 0x1a4   : > { %1895 = vrot.lane.b32.xlu0 %v1812_v20, %s2991_s19 }
 0x1a5   : > { %v1490_v53 = vpop.permute.xlu1 %1489 }
 0x1a6   : > { %1577 = vst.msk [vmem:[#allocation3 + $0x48] sm:$0xff] %vm1567_vm9, %v1490_v53  ;;  %v1683_v16 = vpop.permute.xlu0 %1682  ;;  %v1434_v53 = vld [vmem:[#allocation2 + $0x170] sm:$0xff] }
 0x1a7   : > { %1317 = vrot.lane.b32.xlu1 %v1811_v10, %s2988_s16  ;;  %1770 = vst.msk [vmem:[#allocation3 + $0x48] sm:$0xff] %vm1760_vm10, %v1683_v16 }
 0x1a8   : > { %1511 = vrot.lane.b32.xlu0 %v3332_v9, %s2989_s17  ;;  %v1620_v9 = vld [vmem:[#allocation2 + $0x121] sm:$0xff] }
 0x1a9   : > { %v1105_v22 = vpop.permute.xlu1 %1104 }
 0x1aa   : > { %1191 = vst.msk [vmem:[#allocation3 + $0x50] sm:$0xff] %vm1180_vm7, %v1105_v22  ;;  %v1107_v1 = vpop.permute.xlu0 %1106 }
 0x1ab   : > { %1319 = vrot.lane.b32.xlu1 %v1812_v20, %s2988_s16  ;;  %1192 = vst.msk [vmem:[#allocation3 + $0x58] sm:$0xff] %vm1180_vm7, %v1107_v1 }
 0x1ac   : > { %1513 = vrot.lane.b32.xlu0 %v3342_v14, %s2989_s17 }
 0x1ad   : > { %v1874_v57 = vpop.permute.xlu1 %1873 }
 0x1ae   : > { %1962 = vst.msk [vmem:[#allocation3 + $0x40] sm:$0xff] %vm1953_vm11, %v1874_v57  ;;  %v1876_v51 = vpop.permute.xlu0 %1875  ;;  %v1626_v57 = vld [vmem:[#allocation2 + $0x169] sm:$0xff] }
 0x1af   : > { %935 = vrot.lane.b32.xlu1 %v849_v19, %s2986_s14  ;;  %1963 = vst.msk [vmem:[#allocation3 + $0x48] sm:$0xff] %vm1953_vm11, %v1876_v51 }
 0x1b0   : > { %937 = vrot.lane.b32.xlu0 %v3342_v14, %s2986_s14 }
 0x1b1   : > { %v1298_v4 = vpop.permute.xlu1 %1297 }
 0x1b2   : > { %1384 = vst.msk [vmem:[#allocation3 + $0x50] sm:$0xff] %vm1373_vm8, %v1298_v4  ;;  %v1492_v38 = vpop.permute.xlu0 %1491 }
 0x1b3   : > { %1704 = vrot.lane.b32.xlu1 %v1620_v9, %s2990_s20  ;;  %1578 = vst.msk [vmem:[#allocation3 + $0x50] sm:$0xff] %vm1567_vm9, %v1492_v38 }
 0x1b4   : > { %1706 = vrot.lane.b32.xlu0 %v1621_v30, %s2990_s20 }
 0x1b5   : > { %v1300_v23 = vpop.permute.xlu1 %1299  ;;  %v1994_v24 = vld [vmem:[#allocation3 + $0x40] sm:$0xff] }
 0x1b6   : > { %1385 = vst.msk [vmem:[#allocation3 + $0x58] sm:$0xff] %vm1373_vm8, %v1300_v23  ;;  %2760 = vmatprep.mubr.msk.f32.mxu0 %vm2023_vm12, %v1994_v24  ;;  %v1685_v21 = vpop.permute.xlu0 %1684  ;;  %v1995_v14 = vld [vmem:[#allocation3 + $0x48] sm:$0xff]  ;;  %v1819_v23 = vld [vmem:[#allocation2 + $0x16a] sm:$0xff] }
 0x1b7   : > { %1128 = vrot.lane.b32.xlu1 %v1620_v9, %s2987_s15  ;;  %1771 = vst.msk [vmem:[#allocation3 + $0x50] sm:$0xff] %vm1760_vm10, %v1685_v21  ;;  %2761 = vmatmul.mubr.msk.f32.gmra.mxu0 %vm2023_vm12, %v1995_v14  ;;  %v1627_v9 = vld [vmem:[#allocation2 + $0x171] sm:$0xff] }
 0x1b8   : > { %1130 = vrot.lane.b32.xlu0 %v1621_v30, %s2987_s15  ;;  %v1820_v21 = vld [vmem:[#allocation2 + $0x172] sm:$0xff] }
 0x1b9   : > { %v1494_v55 = vpop.permute.xlu1 %1493 }
 0x1ba   : > { %1579 = vst.msk [vmem:[#allocation3 + $0x58] sm:$0xff] %vm1567_vm9, %v1494_v55  ;;  %v1687_v63 = vpop.permute.xlu0 %1686 }
 0x1bb   : > { %1897 = vrot.lane.b32.xlu1 %v1813_v50, %s2991_s19  ;;  %1772 = vst.msk [vmem:[#allocation3 + $0x58] sm:$0xff] %vm1760_vm10, %v1687_v63 }
 0x1bc   : > { %1899 = vrot.lane.b32.xlu0 %v1814_v18, %s2991_s19 }
 0x1bd   : > { %v1109_v25 = vpop.permute.xlu1 %1108 }
 0x1be   : > { %1193 = vst.msk [vmem:[#allocation3 + $0x60] sm:$0xff] %vm1180_vm7, %v1109_v25  ;;  %v1111_v59 = vpop.permute.xlu0 %1110 }
 0x1bf   : > { %1321 = vrot.lane.b32.xlu1 %v1813_v50, %s2988_s16  ;;  %1194 = vst.msk [vmem:[#allocation3 + $0x68] sm:$0xff] %vm1180_vm7, %v1111_v59  ;;  %v1436_v59 = vld [vmem:[#allocation2 + $0x188] sm:$0xff] }
 0x1c0   : > { %1515 = vrot.lane.b32.xlu0 %v1429_v3, %s2989_s17 }
 0x1c1   : > { %v1878_v28 = vpop.permute.xlu1 %1877 }
 0x1c2   : > { %1964 = vst.msk [vmem:[#allocation3 + $0x50] sm:$0xff] %vm1953_vm11, %v1878_v28  ;;  %v1880_v41 = vpop.permute.xlu0 %1879 }
 0x1c3   : > { %1323 = vrot.lane.b32.xlu1 %v1814_v18, %s2988_s16  ;;  %1965 = vst.msk [vmem:[#allocation3 + $0x58] sm:$0xff] %vm1953_vm11, %v1880_v41  ;;  %v1435_v18 = vld [vmem:[#allocation2 + $0x180] sm:$0xff] }
 0x1c4   : > { %1517 = vrot.lane.b32.xlu0 %v1430_v32, %s2989_s17 }
 0x1c5   : > { %v1302_v6 = vpop.permute.xlu1 %1301 }
 0x1c6   : > { %1386 = vst.msk [vmem:[#allocation3 + $0x60] sm:$0xff] %vm1373_vm8, %v1302_v6  ;;  %v1496_v27 = vpop.permute.xlu0 %1495  ;;  %v1628_v6 = vld [vmem:[#allocation2 + $0x181] sm:$0xff] }
 0x1c7   : > { %939 = vrot.lane.b32.xlu1 %v1429_v3, %s2986_s14  ;;  %1580 = vst.msk [vmem:[#allocation3 + $0x60] sm:$0xff] %vm1567_vm9, %v1496_v27 }
 0x1c8   : > { %941 = vrot.lane.b32.xlu0 %v1430_v32, %s2986_s14 }
 0x1c9   : > { %v1304_v56 = vpop.permute.xlu1 %1303  ;;  %v1996_v58 = vld [vmem:[#allocation3 + $0x50] sm:$0xff] }
 0x1ca   : > { %1387 = vst.msk [vmem:[#allocation3 + $0x68] sm:$0xff] %vm1373_vm8, %v1304_v56  ;;  %2763 = vmatprep.mubr.msk.f32.mxu0 %vm2023_vm12, %v1996_v58  ;;  %v1689_v39 = vpop.permute.xlu0 %1688  ;;  %v1997_v61 = vld [vmem:[#allocation3 + $0x58] sm:$0xff] }
 0x1cb   : > { %1708 = vrot.lane.b32.xlu1 %v1622_v49, %s2990_s20  ;;  %1773 = vst.msk [vmem:[#allocation3 + $0x60] sm:$0xff] %vm1760_vm10, %v1689_v39  ;;  %2764 = vmatmul.mubr.msk.f32.gmra.mxu0 %vm2023_vm12, %v1997_v61  ;;  %v1821_v39 = vld [vmem:[#allocation2 + $0x182] sm:$0xff] }
 0x1cc   : > { %1710 = vrot.lane.b32.xlu0 %v1623_v12, %s2990_s20 }
 0x1cd   : > { %v1498_v46 = vpop.permute.xlu1 %1497 }
 0x1ce   : > { %1581 = vst.msk [vmem:[#allocation3 + $0x68] sm:$0xff] %vm1567_vm9, %v1498_v46  ;;  %v1691_v40 = vpop.permute.xlu0 %1690  ;;  %v1822_v46 = vld [vmem:[#allocation2 + $0x18a] sm:$0xff] }
 0x1cf   : > { %1132 = vrot.lane.b32.xlu1 %v1622_v49, %s2987_s15  ;;  %1774 = vst.msk [vmem:[#allocation3 + $0x68] sm:$0xff] %vm1760_vm10, %v1691_v40  ;;  %v1629_v49 = vld [vmem:[#allocation2 + $0x189] sm:$0xff] }
 0x1d0   : > { %1134 = vrot.lane.b32.xlu0 %v1623_v12, %s2987_s15 }
 0x1d1   : > { %v1113_v5 = vpop.permute.xlu1 %1112 }
 0x1d2   : > { %1195 = vst.msk [vmem:[#allocation3 + $0x70] sm:$0xff] %vm1180_vm7, %v1113_v5  ;;  %v1115_v33 = vpop.permute.xlu0 %1114 }
 0x1d3   : > { %1901 = vrot.lane.b32.xlu1 %v1815_v43, %s2991_s19  ;;  %1196 = vst.msk [vmem:[#allocation3 + $0x78] sm:$0xff] %vm1180_vm7, %v1115_v33 }
 0x1d4   : > { %1903 = vrot.lane.b32.xlu0 %v1816_v29, %s2991_s19 }
 0x1d5   : > { %v1882_v11 = vpop.permute.xlu1 %1881 }
 0x1d6   : > { %1966 = vst.msk [vmem:[#allocation3 + $0x60] sm:$0xff] %vm1953_vm11, %v1882_v11  ;;  %v1884_v15 = vpop.permute.xlu0 %1883 }
 0x1d7   : > { %1325 = vrot.lane.b32.xlu1 %v1815_v43, %s2988_s16  ;;  %1967 = vst.msk [vmem:[#allocation3 + $0x68] sm:$0xff] %vm1953_vm11, %v1884_v15  ;;  %v1630_v15 = vld [vmem:[#allocation2 + $0x199] sm:$0xff] }
 0x1d8   : > { %1519 = vrot.lane.b32.xlu0 %v1431_v60, %s2989_s17 }
 0x1d9   : > { %v1306_v8 = vpop.permute.xlu1 %1305 }
 0x1da   : > { %1388 = vst.msk [vmem:[#allocation3 + $0x70] sm:$0xff] %vm1373_vm8, %v1306_v8  ;;  %v1500_v0 = vpop.permute.xlu0 %1499 }
 0x1db   : > { %1327 = vrot.lane.b32.xlu1 %v1816_v29, %s2988_s16  ;;  %1582 = vst.msk [vmem:[#allocation3 + $0x70] sm:$0xff] %vm1567_vm9, %v1500_v0  ;;  %v1437_v29 = vld [vmem:[#allocation2 + $0x198] sm:$0xff] }
 0x1dc   : > { %1521 = vrot.lane.b32.xlu0 %v1432_v54, %s2989_s17 }
 0x1dd   : > { %v1308_v34 = vpop.permute.xlu1 %1307  ;;  %v1998_v42 = vld [vmem:[#allocation3 + $0x60] sm:$0xff] }
 0x1de   : > { %1389 = vst.msk [vmem:[#allocation3 + $0x78] sm:$0xff] %vm1373_vm8, %v1308_v34  ;;  %2766 = vmatprep.mubr.msk.f32.mxu0 %vm2023_vm12, %v1998_v42  ;;  %v1693_v47 = vpop.permute.xlu0 %1692  ;;  %v1999_v35 = vld [vmem:[#allocation3 + $0x68] sm:$0xff] }
 0x1df   : > { %943 = vrot.lane.b32.xlu1 %v1431_v60, %s2986_s14  ;;  %1775 = vst.msk [vmem:[#allocation3 + $0x70] sm:$0xff] %vm1760_vm10, %v1693_v47  ;;  %2767 = vmatmul.mubr.msk.f32.gmra.mxu0 %vm2023_vm12, %v1999_v35  ;;  %v1823_v34 = vld [vmem:[#allocation2 + $0x19a] sm:$0xff] }
 0x1e0   : > { %945 = vrot.lane.b32.xlu0 %v1432_v54, %s2986_s14  ;;  %v1438_v54 = vld [vmem:[#allocation2 + $0x1a0] sm:$0xff] }
 0x1e1   : > { %v1502_v37 = vpop.permute.xlu1 %1501  ;;  %v1631_v35 = vld [vmem:[#allocation2 + $0x1a1] sm:$0xff] }
 0x1e2   : > { %1583 = vst.msk [vmem:[#allocation3 + $0x78] sm:$0xff] %vm1567_vm9, %v1502_v37  ;;  %v1695_v26 = vpop.permute.xlu0 %1694 }
 0x1e3   : > { %1712 = vrot.lane.b32.xlu1 %v1624_v36, %s2990_s20  ;;  %1776 = vst.msk [vmem:[#allocation3 + $0x78] sm:$0xff] %vm1760_vm10, %v1695_v26 }
 0x1e4   : > { %1714 = vrot.lane.b32.xlu0 %v1625_v13, %s2990_s20 }
 0x1e5   : > { %v1117_v62 = vpop.permute.xlu1 %1116 }
 0x1e6   : > { %1197 = vst.msk [vmem:[#allocation3 + $0x80] sm:$0xff] %vm1180_vm7, %v1117_v62  ;;  %v1119_v17 = vpop.permute.xlu0 %1118 }
 0x1e7   : > { %1136 = vrot.lane.b32.xlu1 %v1624_v36, %s2987_s15  ;;  %1198 = vst.msk [vmem:[#allocation3 + $0x88] sm:$0xff] %vm1180_vm7, %v1119_v17 }
 0x1e8   : > { %1138 = vrot.lane.b32.xlu0 %v1625_v13, %s2987_s15 }
 0x1e9   : > { %v1886_v2 = vpop.permute.xlu1 %1885 }
 0x1ea   : > { %1968 = vst.msk [vmem:[#allocation3 + $0x70] sm:$0xff] %vm1953_vm11, %v1886_v2  ;;  %v1888_v10 = vpop.permute.xlu0 %1887 }
 0x1eb   : > { %1905 = vrot.lane.b32.xlu1 %v1817_v31, %s2991_s19  ;;  %1969 = vst.msk [vmem:[#allocation3 + $0x78] sm:$0xff] %vm1953_vm11, %v1888_v10 }
 0x1ec   : > { %1907 = vrot.lane.b32.xlu0 %v1818_v7, %s2991_s19 }
 0x1ed   : > { %v1310_v44 = vpop.permute.xlu1 %1309 }
 0x1ee   : > { %1390 = vst.msk [vmem:[#allocation3 + $0x80] sm:$0xff] %vm1373_vm8, %v1310_v44  ;;  %v1504_v20 = vpop.permute.xlu0 %1503 }
 0x1ef   : > { %1329 = vrot.lane.b32.xlu1 %v1817_v31, %s2988_s16  ;;  %1584 = vst.msk [vmem:[#allocation3 + $0x80] sm:$0xff] %vm1567_vm9, %v1504_v20  ;;  %v1824_v31 = vld [vmem:[#allocation2 + $0x1a2] sm:$0xff] }
 0x1f0   : > { %1523 = vrot.lane.b32.xlu0 %v1433_v48, %s2989_s17 }
 0x1f1   : > { %v1312_v45 = vpop.permute.xlu1 %1311  ;;  %v2000_v52 = vld [vmem:[#allocation3 + $0x70] sm:$0xff] }
 0x1f2   : > { %1391 = vst.msk [vmem:[#allocation3 + $0x88] sm:$0xff] %vm1373_vm8, %v1312_v45  ;;  %2769 = vmatprep.mubr.msk.f32.mxu0 %vm2023_vm12, %v2000_v52  ;;  %v1697_v16 = vpop.permute.xlu0 %1696  ;;  %v2001_v22 = vld [vmem:[#allocation3 + $0x78] sm:$0xff] }
 0x1f3   : > { %1331 = vrot.lane.b32.xlu1 %v1818_v7, %s2988_s16  ;;  %1777 = vst.msk [vmem:[#allocation3 + $0x80] sm:$0xff] %vm1760_vm10, %v1697_v16  ;;  %2770 = vmatmul.mubr.msk.f32.gmra.mxu0 %vm2023_vm12, %v2001_v22 }
 0x1f4   : > { %1525 = vrot.lane.b32.xlu0 %v1434_v53, %s2989_s17 }
 0x1f5   : > { %v1506_v1 = vpop.permute.xlu1 %1505 }
 0x1f6   : > { %1585 = vst.msk [vmem:[#allocation3 + $0x88] sm:$0xff] %vm1567_vm9, %v1506_v1  ;;  %v1699_v19 = vpop.permute.xlu0 %1698 }
 0x1f7   : > { %947 = vrot.lane.b32.xlu1 %v1433_v48, %s2986_s14  ;;  %1778 = vst.msk [vmem:[#allocation3 + $0x88] sm:$0xff] %vm1760_vm10, %v1699_v19 }
 0x1f8   : > { %949 = vrot.lane.b32.xlu0 %v1434_v53, %s2986_s14 }
 0x1f9   : > { %v1121_v51 = vpop.permute.xlu1 %1120 }
 0x1fa   : > { %1199 = vst.msk [vmem:[#allocation3 + $0x90] sm:$0xff] %vm1180_vm7, %v1121_v51  ;;  %v1123_v4 = vpop.permute.xlu0 %1122 }
 0x1fb   : > { %1716 = vrot.lane.b32.xlu1 %v1626_v57, %s2990_s20  ;;  %1200 = vst.msk [vmem:[#allocation3 + $0x98] sm:$0xff] %vm1180_vm7, %v1123_v4 }
 0x1fc   : > { %1718 = vrot.lane.b32.xlu0 %v1627_v9, %s2990_s20 }
 0x1fd   : > { %v1890_v30 = vpop.permute.xlu1 %1889 }
 0x1fe   : > { %1970 = vst.msk [vmem:[#allocation3 + $0x80] sm:$0xff] %vm1953_vm11, %v1890_v30  ;;  %v1892_v38 = vpop.permute.xlu0 %1891 }
 0x1ff   : > { %1140 = vrot.lane.b32.xlu1 %v1626_v57, %s2987_s15  ;;  %1971 = vst.msk [vmem:[#allocation3 + $0x88] sm:$0xff] %vm1953_vm11, %v1892_v38 }
 0x200   : > { %1142 = vrot.lane.b32.xlu0 %v1627_v9, %s2987_s15 }
 0x201   : > { %v1314_v24 = vpop.permute.xlu1 %1313 }
 0x202   : > { %1392 = vst.msk [vmem:[#allocation3 + $0x90] sm:$0xff] %vm1373_vm8, %v1314_v24  ;;  %v1508_v14 = vpop.permute.xlu0 %1507 }
 0x203   : > { %1909 = vrot.lane.b32.xlu1 %v1819_v23, %s2991_s19  ;;  %1586 = vst.msk [vmem:[#allocation3 + $0x90] sm:$0xff] %vm1567_vm9, %v1508_v14 }
 0x204   : > { %1911 = vrot.lane.b32.xlu0 %v1820_v21, %s2991_s19 }
 0x205   : > { %v1316_v50 = vpop.permute.xlu1 %1315  ;;  %v2002_v55 = vld [vmem:[#allocation3 + $0x80] sm:$0xff] }
 0x206   : > { %1393 = vst.msk [vmem:[#allocation3 + $0x98] sm:$0xff] %vm1373_vm8, %v1316_v50  ;;  %2772 = vmatprep.mubr.msk.f32.mxu1 %vm2023_vm12, %v2002_v55  ;;  %v1510_v63 = vpop.permute.xlu0 %1509  ;;  %v2003_v25 = vld [vmem:[#allocation3 + $0x88] sm:$0xff] }
 0x207   : > { %1333 = vrot.lane.b32.xlu1 %v1819_v23, %s2988_s16  ;;  %1587 = vst.msk [vmem:[#allocation3 + $0x98] sm:$0xff] %vm1567_vm9, %v1510_v63  ;;  %2773 = vmatmul.mubr.msk.f32.vlgmr.msra.gmra.mxu1 %vm2023_vm12, %v2003_v25 }
 0x208   : > { %1527 = vrot.lane.b32.xlu0 %v1435_v18, %s2989_s17 }
 0x209   : > { %v932_v3 = vpop.permute.xlu1 %931 }
 0x20a   : > { %1008 = vst.msk [vmem:[#allocation3 + $0xa0] sm:$0xff] %vm987_vm6, %v932_v3  ;;  %v934_v28 = vpop.permute.xlu0 %933 }
 0x20b   : > { %1335 = vrot.lane.b32.xlu1 %v1820_v21, %s2988_s16  ;;  %1009 = vst.msk [vmem:[#allocation3 + $0xa8] sm:$0xff] %vm987_vm6, %v934_v28 }
 0x20c   : > { %1529 = vrot.lane.b32.xlu0 %v1436_v59, %s2989_s17 }
 0x20d   : > { %v1701_v32 = vpop.permute.xlu1 %1700 }
 0x20e   : > { %1779 = vst.msk [vmem:[#allocation3 + $0x90] sm:$0xff] %vm1760_vm10, %v1701_v32  ;;  %v1703_v41 = vpop.permute.xlu0 %1702 }
 0x20f   : > { %951 = vrot.lane.b32.xlu1 %v1435_v18, %s2986_s14  ;;  %1780 = vst.msk [vmem:[#allocation3 + $0x98] sm:$0xff] %vm1760_vm10, %v1703_v41 }
 0x210   : > { %953 = vrot.lane.b32.xlu0 %v1436_v59, %s2986_s14  ;;  %s2656_s14 = sshll.u32 %s3957_s11, 8 }
 0x211   : > { %v1125_v27 = vpop.permute.xlu1 %1124 }
 0x212   : > { %1201 = vst.msk [vmem:[#allocation3 + $0xa0] sm:$0xff] %vm1180_vm7, %v1125_v27  ;;  %v1127_v56 = vpop.permute.xlu0 %1126 }
 0x213   : > { %1720 = vrot.lane.b32.xlu1 %v1628_v6, %s2990_s20  ;;  %1202 = vst.msk [vmem:[#allocation3 + $0xa8] sm:$0xff] %vm1180_vm7, %v1127_v56 }
 0x214   : > { %1722 = vrot.lane.b32.xlu0 %v1629_v49, %s2990_s20 }
 0x215   : > { %v1894_v58 = vpop.permute.xlu1 %1893 }
 0x216   : > { %1972 = vst.msk [vmem:[#allocation3 + $0x90] sm:$0xff] %vm1953_vm11, %v1894_v58  ;;  %v1896_v12 = vpop.permute.xlu0 %1895 }
 0x217   : > { %1144 = vrot.lane.b32.xlu1 %v1628_v6, %s2987_s15  ;;  %1973 = vst.msk [vmem:[#allocation3 + $0x98] sm:$0xff] %vm1953_vm11, %v1896_v12 }
 0x218   : > { %1146 = vrot.lane.b32.xlu0 %v1629_v49, %s2987_s15  ;;  %s3968_s15 = scalar_lea.vmem [#allocation4], %s2656_s14 }
 0x219   : > { %v1318_v61 = vpop.permute.xlu1 %1317 }
 0x21a   : > { %1394 = vst.msk [vmem:[#allocation3 + $0xa0] sm:$0xff] %vm1373_vm8, %v1318_v61  ;;  %v1512_v40 = vpop.permute.xlu0 %1511 }
 0x21b   : > { %1913 = vrot.lane.b32.xlu1 %v1821_v39, %s2991_s19  ;;  %1588 = vst.msk [vmem:[#allocation3 + $0xa0] sm:$0xff] %vm1567_vm9, %v1512_v40 }
 0x21c   : > { %1915 = vrot.lane.b32.xlu0 %v1822_v46, %s2991_s19 }
 0x21d   : > { %v1320_v43 = vpop.permute.xlu1 %1319  ;;  %v2004_v5 = vld [vmem:[#allocation3 + $0x90] sm:$0xff] }
 0x21e   : > { %1395 = vst.msk [vmem:[#allocation3 + $0xa8] sm:$0xff] %vm1373_vm8, %v1320_v43  ;;  %2775 = vmatprep.mubr.msk.f32.mxu1 %vm2023_vm12, %v2004_v5  ;;  %v1514_v33 = vpop.permute.xlu0 %1513  ;;  %v2005_v11 = vld [vmem:[#allocation3 + $0x98] sm:$0xff] }
 0x21f   : > { %1337 = vrot.lane.b32.xlu1 %v1821_v39, %s2988_s16  ;;  %1589 = vst.msk [vmem:[#allocation3 + $0xa8] sm:$0xff] %vm1567_vm9, %v1514_v33  ;;  %2776 = vmatmul.mubr.msk.f32.gmra.mxu1 %vm2023_vm12, %v2005_v11 }
 0x220   : > { %1531 = vrot.lane.b32.xlu0 %v1437_v29, %s2989_s17 }
 0x221   : > { %v936_v60 = vpop.permute.xlu1 %935 }
 0x222   : > { %1010 = vst.msk [vmem:[#allocation3 + $0xb0] sm:$0xff] %vm987_vm6, %v936_v60  ;;  %v938_v8 = vpop.permute.xlu0 %937 }
 0x223   : > { %1339 = vrot.lane.b32.xlu1 %v1822_v46, %s2988_s16  ;;  %1011 = vst.msk [vmem:[#allocation3 + $0xb8] sm:$0xff] %vm987_vm6, %v938_v8  ;;  %s2700_s16 = sshll.u32 %s3052_s23, 12 }
 0x224   : > { %1724 = vrot.lane.b32.xlu0 %v1630_v15, %s2990_s20  ;;  %s4080_s27 = scalar_lea.hbm %s4199_s4, %s2700_s16 }
 0x225   : > { %v1705_v0 = vpop.permute.xlu1 %1704 }
 0x226   : > { %1781 = vst.msk [vmem:[#allocation3 + $0xa0] sm:$0xff] %vm1760_vm10, %v1705_v0  ;;  %v1707_v42 = vpop.permute.xlu0 %1706 }
 0x227   : > { %1533 = vrot.lane.b32.xlu1 %v1438_v54, %s2989_s17  ;;  %1782 = vst.msk [vmem:[#allocation3 + $0xa8] sm:$0xff] %vm1760_vm10, %v1707_v42  ;;  %v2750_v47 = vpop.f32.mrf.mxu0  ;;  %s2511_s17 = sshll.u32 %s3968_s15, 4  ;;  %s4083_s17 = int_to_ptr.vmem [resolvable:$true] %s2511_s17 }
 0x228   : > { %2350 = vst [vmem:[%s3968_s15 + $0x8] sm:$0xff] %v2750_v47  ;;  %v2420_v37 = vmul.f32 %v2750_v47, %v2750_v47  ;;  %1917 = vrot.lane.b32.xlu0 %v1823_v34, %s2991_s19  ;;  %s2865_s8 = scalar_lea.vmem %s4083_s17, 4096  ;;  %p2872_p0 = scmp.lt.s32.totalorder %s4083_s17, %s2870_s10 }
 0x229   : > { %v1129_v36 = vpop.permute.xlu1 %1128  ;;  %v2190_v13 = vpop.f32.mrf.mxu0  ;;  %p2866_p11 = scmp.ne.s32.totalorder %s4083_s17, %s2865_s8  ;;  %p2873_p1 = scmp.lt.s32.totalorder %s2871_s12, %s2865_s8 }
 0x22a   : > { %1203 = vst.msk [vmem:[#allocation3 + $0xb0] sm:$0xff] %vm1180_vm7, %v1129_v36  ;;  %v1131_v26 = vpop.permute.xlu0 %1130  ;;  %2349 = vst [vmem:[%s3968_s15] sm:$0xff] %v2190_v13  ;;  %v2381_v62 = vadd.f32 %v2750_v47, %v2190_v13  ;;  %v2419_v17 = vmul.f32 %v2190_v13, %v2190_v13 }
 0x22b   : > { %1726 = vrot.lane.b32.xlu1 %v1631_v35, %s2990_s20  ;;  %1204 = vst.msk [vmem:[#allocation3 + $0xb8] sm:$0xff] %vm1180_vm7, %v1131_v26  ;;  %p2867_p12 = pnand %p2866_p11, %p3071_p5  ;;  %p2874_p2 = por %p2873_p1, %p2872_p0 }
 0x22c   : > { %v2451_v2 = vadd.f32 %v2420_v37, %v2419_v17 }
 0x22d   : > { %v1898_v7 = vpop.permute.xlu1 %1897  ;;  %p2868_p13 = pneg %p2867_p12 }
 0x22e   : > { %1974 = vst.msk [vmem:[#allocation3 + $0xa0] sm:$0xff] %vm1953_vm11, %v1898_v7  ;;  %v1900_v10 = vpop.permute.xlu0 %1899 }
 0x22f   : > { %1919 = vrot.lane.b32.xlu1 %v1824_v31, %s2991_s19  ;;  %1975 = vst.msk [vmem:[#allocation3 + $0xa8] sm:$0xff] %vm1953_vm11, %v1900_v10  ;;  %p2875_p3 = pnand %p2874_p2, %p2868_p13 }
 0x231   : > { %v1322_v44 = vpop.permute.xlu1 %1321 }
 0x232   : > { %1396 = vst.msk [vmem:[#allocation3 + $0xb0] sm:$0xff] %vm1373_vm8, %v1322_v44  ;;  %v1516_v48 = vpop.permute.xlu0 %1515 }
 0x233   : > { %1590 = vst.msk [vmem:[#allocation3 + $0xb0] sm:$0xff] %vm1567_vm9, %v1516_v48 }
 0x235   : > { %v1324_v20 = vpop.permute.xlu1 %1323  ;;  %v2006_v45 = vld [vmem:[#allocation3 + $0xa0] sm:$0xff] }
 0x236   : > { %1397 = vst.msk [vmem:[#allocation3 + $0xb8] sm:$0xff] %vm1373_vm8, %v1324_v20  ;;  %2778 = vmatprep.mubr.msk.f32.mxu1 %vm2023_vm12, %v2006_v45  ;;  %v1518_v52 = vpop.permute.xlu0 %1517  ;;  %v2007_v53 = vld [vmem:[#allocation3 + $0xa8] sm:$0xff] }
 0x237   : > { %1591 = vst.msk [vmem:[#allocation3 + $0xb8] sm:$0xff] %vm1567_vm9, %v1518_v52  ;;  %2779 = vmatmul.mubr.msk.f32.gmra.mxu1 %vm2023_vm12, %v2007_v53 }
 0x239   : > { %v940_v16 = vpop.permute.xlu1 %939 }
 0x23a   : > { %1012 = vst.msk [vmem:[#allocation3 + $0xc0] sm:$0xff] %vm987_vm6, %v940_v16  ;;  %v942_v22 = vpop.permute.xlu0 %941 }
 0x23b   : > { %1013 = vst.msk [vmem:[#allocation3 + $0xc8] sm:$0xff] %vm987_vm6, %v942_v22  ;;  %v2753_v1 = vpop.f32.mrf.mxu0 }
 0x23c   : > { %2352 = vst [vmem:[%s3968_s15 + $0x18] sm:$0xff] %v2753_v1  ;;  %v2422_v51 = vmul.f32 %v2753_v1, %v2753_v1 }
 0x23d   : > { %v1709_v19 = vpop.permute.xlu1 %1708  ;;  %v2200_v57 = vpop.f32.mrf.mxu0 }
 0x23e   : > { %1783 = vst.msk [vmem:[#allocation3 + $0xb0] sm:$0xff] %vm1760_vm10, %v1709_v19  ;;  %2351 = vst [vmem:[%s3968_s15 + $0x10] sm:$0xff] %v2200_v57  ;;  %v2382_v9 = vadd.f32 %v2381_v62, %v2200_v57  ;;  %v2421_v4 = vmul.f32 %v2200_v57, %v2200_v57  ;;  %v1711_v30 = vpop.permute.xlu0 %1710 }
 0x23f   : > { %1784 = vst.msk [vmem:[#allocation3 + $0xb8] sm:$0xff] %vm1760_vm10, %v1711_v30 }
 0x240   : > { %v2452_v38 = vadd.f32 %v2451_v2, %v2421_v4  ;;  %v2383_v24 = vadd.f32 %v2753_v1, %v2382_v9 }
 0x241   : > { %v1133_v23 = vpop.permute.xlu1 %1132 }
 0x242   : > { %1205 = vst.msk [vmem:[#allocation3 + $0xc0] sm:$0xff] %vm1180_vm7, %v1133_v23  ;;  %v1135_v21 = vpop.permute.xlu0 %1134  ;;  %v2453_v14 = vadd.f32 %v2452_v38, %v2422_v51 }
 0x243   : > { %1206 = vst.msk [vmem:[#allocation3 + $0xc8] sm:$0xff] %vm1180_vm7, %v1135_v21 }
 0x245   : > { %v1902_v50 = vpop.permute.xlu1 %1901 }
 0x246   : > { %1976 = vst.msk [vmem:[#allocation3 + $0xb0] sm:$0xff] %vm1953_vm11, %v1902_v50  ;;  %v1904_v55 = vpop.permute.xlu0 %1903 }
 0x247   : > { %1977 = vst.msk [vmem:[#allocation3 + $0xb8] sm:$0xff] %vm1953_vm11, %v1904_v55 }
 0x249   : > { %v1326_v18 = vpop.permute.xlu1 %1325 }
 0x24a   : > { %1398 = vst.msk [vmem:[#allocation3 + $0xc0] sm:$0xff] %vm1373_vm8, %v1326_v18  ;;  %v1520_v63 = vpop.permute.xlu0 %1519 }
 0x24b   : > { %1592 = vst.msk [vmem:[#allocation3 + $0xc0] sm:$0xff] %vm1567_vm9, %v1520_v63 }
 0x24d   : > { %v1328_v25 = vpop.permute.xlu1 %1327  ;;  %v2008_v3 = vld [vmem:[#allocation3 + $0xb0] sm:$0xff] }
 0x24e   : > { %1399 = vst.msk [vmem:[#allocation3 + $0xc8] sm:$0xff] %vm1373_vm8, %v1328_v25  ;;  %2781 = vmatprep.mubr.msk.f32.mxu1 %vm2023_vm12, %v2008_v3  ;;  %v1522_v59 = vpop.permute.xlu0 %1521  ;;  %v2009_v28 = vld [vmem:[#allocation3 + $0xb8] sm:$0xff] }
 0x24f   : > { %1593 = vst.msk [vmem:[#allocation3 + $0xc8] sm:$0xff] %vm1567_vm9, %v1522_v59  ;;  %v2756_v32 = vpop.f32.mrf.mxu0  ;;  %2782 = vmatmul.mubr.msk.f32.gmra.mxu1 %vm2023_vm12, %v2009_v28 }
 0x250   : > { %2354 = vst [vmem:[%s3968_s15 + $0x28] sm:$0xff] %v2756_v32  ;;  %v2424_v27 = vmul.f32 %v2756_v32, %v2756_v32 }
 0x251   : > { %v944_v41 = vpop.permute.xlu1 %943  ;;  %v2210_v6 = vpop.f32.mrf.mxu0 }
 0x252   : > { %1014 = vst.msk [vmem:[#allocation3 + $0xd0] sm:$0xff] %vm987_vm6, %v944_v41  ;;  %2353 = vst [vmem:[%s3968_s15 + $0x20] sm:$0xff] %v2210_v6  ;;  %v2384_v49 = vadd.f32 %v2383_v24, %v2210_v6  ;;  %v2423_v56 = vmul.f32 %v2210_v6, %v2210_v6  ;;  %v946_v58 = vpop.permute.xlu0 %945 }
 0x253   : > { %1015 = vst.msk [vmem:[#allocation3 + $0xd8] sm:$0xff] %vm987_vm6, %v946_v58 }
 0x254   : > { %v2454_v12 = vadd.f32 %v2453_v14, %v2423_v56  ;;  %v2385_v61 = vadd.f32 %v2756_v32, %v2384_v49 }
 0x255   : > { %v1713_v39 = vpop.permute.xlu1 %1712 }
 0x256   : > { %1785 = vst.msk [vmem:[#allocation3 + $0xc0] sm:$0xff] %vm1760_vm10, %v1713_v39  ;;  %v1715_v46 = vpop.permute.xlu0 %1714  ;;  %v2455_v40 = vadd.f32 %v2454_v12, %v2424_v27 }
 0x257   : > { %1786 = vst.msk [vmem:[#allocation3 + $0xc8] sm:$0xff] %vm1760_vm10, %v1715_v46 }
 0x259   : > { %v1137_v43 = vpop.permute.xlu1 %1136 }
 0x25a   : > { %1207 = vst.msk [vmem:[#allocation3 + $0xd0] sm:$0xff] %vm1180_vm7, %v1137_v43  ;;  %v1139_v5 = vpop.permute.xlu0 %1138 }
 0x25b   : > { %1208 = vst.msk [vmem:[#allocation3 + $0xd8] sm:$0xff] %vm1180_vm7, %v1139_v5 }
 0x25d   : > { %v1906_v29 = vpop.permute.xlu1 %1905 }
 0x25e   : > { %1978 = vst.msk [vmem:[#allocation3 + $0xc0] sm:$0xff] %vm1953_vm11, %v1906_v29  ;;  %v1908_v33 = vpop.permute.xlu0 %1907 }
 0x25f   : > { %1979 = vst.msk [vmem:[#allocation3 + $0xc8] sm:$0xff] %vm1953_vm11, %v1908_v33 }
 0x261   : > { %v1330_v11 = vpop.permute.xlu1 %1329 }
 0x262   : > { %1400 = vst.msk [vmem:[#allocation3 + $0xd0] sm:$0xff] %vm1373_vm8, %v1330_v11  ;;  %v1524_v60 = vpop.permute.xlu0 %1523 }
 0x263   : > { %1594 = vst.msk [vmem:[#allocation3 + $0xd0] sm:$0xff] %vm1567_vm9, %v1524_v60  ;;  %v2759_v15 = vpop.f32.mrf.mxu0 }
 0x264   : > { %2356 = vst [vmem:[%s3968_s15 + $0x38] sm:$0xff] %v2759_v15  ;;  %v2426_v34 = vmul.f32 %v2759_v15, %v2759_v15 }
 0x265   : > { %v1332_v8 = vpop.permute.xlu1 %1331  ;;  %v2010_v54 = vld [vmem:[#allocation3 + $0xc0] sm:$0xff]  ;;  %v2220_v0 = vpop.f32.mrf.mxu0 }
 0x266   : > { %1401 = vst.msk [vmem:[#allocation3 + $0xd8] sm:$0xff] %vm1373_vm8, %v1332_v8  ;;  %2784 = vmatprep.mubr.msk.f32.mxu1 %vm2023_vm12, %v2010_v54  ;;  %2355 = vst [vmem:[%s3968_s15 + $0x30] sm:$0xff] %v2220_v0  ;;  %v2386_v42 = vadd.f32 %v2385_v61, %v2220_v0  ;;  %v2425_v47 = vmul.f32 %v2220_v0, %v2220_v0  ;;  %v1526_v35 = vpop.permute.xlu0 %1525  ;;  %v2011_v36 = vld [vmem:[#allocation3 + $0xc8] sm:$0xff] }
 0x267   : > { %1595 = vst.msk [vmem:[#allocation3 + $0xd8] sm:$0xff] %vm1567_vm9, %v1526_v35  ;;  %2785 = vmatmul.mubr.msk.f32.gmra.mxu1 %vm2023_vm12, %v2011_v36 }
 0x268   : > { %v2456_v37 = vadd.f32 %v2455_v40, %v2425_v47  ;;  %v2387_v26 = vadd.f32 %v2759_v15, %v2386_v42 }
 0x269   : > { %v948_v13 = vpop.permute.xlu1 %947 }
 0x26a   : > { %1016 = vst.msk [vmem:[#allocation3 + $0xe0] sm:$0xff] %vm987_vm6, %v948_v13  ;;  %v950_v62 = vpop.permute.xlu0 %949  ;;  %v2457_v17 = vadd.f32 %v2456_v37, %v2426_v34 }
 0x26b   : > { %1017 = vst.msk [vmem:[#allocation3 + $0xe8] sm:$0xff] %vm987_vm6, %v950_v62 }
 0x26d   : > { %v1717_v31 = vpop.permute.xlu1 %1716 }
 0x26e   : > { %1787 = vst.msk [vmem:[#allocation3 + $0xd0] sm:$0xff] %vm1760_vm10, %v1717_v31  ;;  %v1719_v2 = vpop.permute.xlu0 %1718 }
 0x26f   : > { %1788 = vst.msk [vmem:[#allocation3 + $0xd8] sm:$0xff] %vm1760_vm10, %v1719_v2 }
 0x271   : > { %v1141_v7 = vpop.permute.xlu1 %1140 }
 0x272   : > { %1209 = vst.msk [vmem:[#allocation3 + $0xe0] sm:$0xff] %vm1180_vm7, %v1141_v7  ;;  %v1143_v10 = vpop.permute.xlu0 %1142 }
 0x273   : > { %1210 = vst.msk [vmem:[#allocation3 + $0xe8] sm:$0xff] %vm1180_vm7, %v1143_v10 }
 0x275   : > { %v1910_v44 = vpop.permute.xlu1 %1909 }
 0x276   : > { %1980 = vst.msk [vmem:[#allocation3 + $0xd0] sm:$0xff] %vm1953_vm11, %v1910_v44  ;;  %v1912_v48 = vpop.permute.xlu0 %1911 }
 0x277   : > { %1981 = vst.msk [vmem:[#allocation3 + $0xd8] sm:$0xff] %vm1953_vm11, %v1912_v48  ;;  %v2762_v20 = vpop.f32.mrf.mxu0 }
 0x278   : > { %2358 = vst [vmem:[%s3968_s15 + $0x48] sm:$0xff] %v2762_v20  ;;  %v2428_v53 = vmul.f32 %v2762_v20, %v2762_v20 }
 0x279   : > { %v1334_v45 = vpop.permute.xlu1 %1333  ;;  %v2230_v52 = vpop.f32.mrf.mxu0 }
 0x27a   : > { %1402 = vst.msk [vmem:[#allocation3 + $0xe0] sm:$0xff] %vm1373_vm8, %v1334_v45  ;;  %2357 = vst [vmem:[%s3968_s15 + $0x40] sm:$0xff] %v2230_v52  ;;  %v2388_v16 = vadd.f32 %v2387_v26, %v2230_v52  ;;  %v2427_v22 = vmul.f32 %v2230_v52, %v2230_v52  ;;  %v1528_v1 = vpop.permute.xlu0 %1527 }
 0x27b   : > { %1596 = vst.msk [vmem:[#allocation3 + $0xe0] sm:$0xff] %vm1567_vm9, %v1528_v1 }
 0x27c   : > { %v2458_v19 = vadd.f32 %v2457_v17, %v2427_v22  ;;  %v2389_v9 = vadd.f32 %v2762_v20, %v2388_v16 }
 0x27d   : > { %v1336_v57 = vpop.permute.xlu1 %1335  ;;  %v2012_v51 = vld [vmem:[#allocation3 + $0xd0] sm:$0xff] }
 0x27e   : > { %1403 = vst.msk [vmem:[#allocation3 + $0xe8] sm:$0xff] %vm1373_vm8, %v1336_v57  ;;  %2787 = vmatprep.mubr.msk.f32.mxu1 %vm2023_vm12, %v2012_v51  ;;  %v1530_v4 = vpop.permute.xlu0 %1529  ;;  %v2013_v30 = vld [vmem:[#allocation3 + $0xd8] sm:$0xff]  ;;  %v2459_v38 = vadd.f32 %v2458_v19, %v2428_v53 }
 0x27f   : > { %1597 = vst.msk [vmem:[#allocation3 + $0xe8] sm:$0xff] %vm1567_vm9, %v1530_v4  ;;  %2788 = vmatmul.mubr.msk.f32.gmra.mxu1 %vm2023_vm12, %v2013_v30 }
 0x281   : > { %v952_v23 = vpop.permute.xlu1 %951 }
 0x282   : > { %1018 = vst.msk [vmem:[#allocation3 + $0xf0] sm:$0xff] %vm987_vm6, %v952_v23  ;;  %v954_v24 = vpop.permute.xlu0 %953 }
 0x283   : > { %1019 = vst.msk [vmem:[#allocation3 + $0xf8] sm:$0xff] %vm987_vm6, %v954_v24 }
 0x285   : > { %v1721_v21 = vpop.permute.xlu1 %1720 }
 0x286   : > { %1789 = vst.msk [vmem:[#allocation3 + $0xe0] sm:$0xff] %vm1760_vm10, %v1721_v21  ;;  %v1723_v14 = vpop.permute.xlu0 %1722 }
 0x287   : > { %1790 = vst.msk [vmem:[#allocation3 + $0xe8] sm:$0xff] %vm1760_vm10, %v1723_v14 }
 0x289   : > { %v1145_v50 = vpop.permute.xlu1 %1144 }
 0x28a   : > { %1211 = vst.msk [vmem:[#allocation3 + $0xf0] sm:$0xff] %vm1180_vm7, %v1145_v50  ;;  %v1147_v55 = vpop.permute.xlu0 %1146 }
 0x28b   : > { %1212 = vst.msk [vmem:[#allocation3 + $0xf8] sm:$0xff] %vm1180_vm7, %v1147_v55  ;;  %v2765_v18 = vpop.f32.mrf.mxu0 }
 0x28c   : > { %2360 = vst [vmem:[%s3968_s15 + $0x58] sm:$0xff] %v2765_v18  ;;  %v2430_v3 = vmul.f32 %v2765_v18, %v2765_v18 }
 0x28d   : > { %v1914_v63 = vpop.permute.xlu1 %1913  ;;  %v2240_v25 = vpop.f32.mrf.mxu0 }
 0x28e   : > { %1982 = vst.msk [vmem:[#allocation3 + $0xe0] sm:$0xff] %vm1953_vm11, %v1914_v63  ;;  %2359 = vst [vmem:[%s3968_s15 + $0x50] sm:$0xff] %v2240_v25  ;;  %v2390_v59 = vadd.f32 %v2389_v9, %v2240_v25  ;;  %v2429_v28 = vmul.f32 %v2240_v25, %v2240_v25  ;;  %v1916_v32 = vpop.permute.xlu0 %1915 }
 0x28f   : > { %1983 = vst.msk [vmem:[#allocation3 + $0xe8] sm:$0xff] %vm1953_vm11, %v1916_v32 }
 0x290   : > { %v2460_v41 = vadd.f32 %v2459_v38, %v2429_v28  ;;  %v2391_v27 = vadd.f32 %v2765_v18, %v2390_v59 }
 0x291   : > { %v1338_v6 = vpop.permute.xlu1 %1337 }
 0x292   : > { %1404 = vst.msk [vmem:[#allocation3 + $0xf0] sm:$0xff] %vm1373_vm8, %v1338_v6  ;;  %v1532_v49 = vpop.permute.xlu0 %1531  ;;  %v2461_v56 = vadd.f32 %v2460_v41, %v2430_v3 }
 0x293   : > { %1598 = vst.msk [vmem:[#allocation3 + $0xf0] sm:$0xff] %vm1567_vm9, %v1532_v49 }
 0x295   : > { %v1340_v58 = vpop.permute.xlu1 %1339  ;;  %v2014_v12 = vld [vmem:[#allocation3 + $0xe0] sm:$0xff] }
 0x296   : > { %1405 = vst.msk [vmem:[#allocation3 + $0xf8] sm:$0xff] %vm1373_vm8, %v1340_v58  ;;  %2790 = vmatprep.mubr.msk.f32.mxu1 %vm2023_vm12, %v2014_v12  ;;  %v2015_v39 = vld [vmem:[#allocation3 + $0xe8] sm:$0xff]  ;;  %v1725_v61 = vpop.permute.xlu0 %1724 }
 0x297   : > { %2791 = vmatmul.mubr.msk.f32.gmra.mxu1 %vm2023_vm12, %v2015_v39  ;;  %1791 = vst.msk [vmem:[#allocation3 + $0xf0] sm:$0xff] %vm1760_vm10, %v1725_v61 }
 0x299   : > { %v1534_v46 = vpop.permute.xlu1 %1533 }
 0x29a   : > { %1599 = vst.msk [vmem:[#allocation3 + $0xf8] sm:$0xff] %vm1567_vm9, %v1534_v46  ;;  %v1918_v40 = vpop.permute.xlu0 %1917 }
 0x29b   : > { %1984 = vst.msk [vmem:[#allocation3 + $0xf0] sm:$0xff] %vm1953_vm11, %v1918_v40 }
 0x29d   : > { %v1727_v43 = vpop.permute.xlu1 %1726 }
 0x29e   : > { %1792 = vst.msk [vmem:[#allocation3 + $0xf8] sm:$0xff] %vm1760_vm10, %v1727_v43 }
 0x29f   : > { %v2768_v5 = vpop.f32.mrf.mxu0 }
 0x2a0   : > { %2362 = vst [vmem:[%s3968_s15 + $0x68] sm:$0xff] %v2768_v5  ;;  %v2432_v11 = vmul.f32 %v2768_v5, %v2768_v5 }
 0x2a1   : > { %v1920_v29 = vpop.permute.xlu1 %1919  ;;  %v2250_v33 = vpop.f32.mrf.mxu0 }
 0x2a2   : > { %1985 = vst.msk [vmem:[#allocation3 + $0xf8] sm:$0xff] %vm1953_vm11, %v1920_v29  ;;  %2361 = vst [vmem:[%s3968_s15 + $0x60] sm:$0xff] %v2250_v33  ;;  %v2392_v60 = vadd.f32 %v2391_v27, %v2250_v33  ;;  %v2431_v15 = vmul.f32 %v2250_v33, %v2250_v33  ;;  %v2016_v8 = vld [vmem:[#allocation3 + $0xf0] sm:$0xff] }
 0x2a3   : > { %2793 = vmatprep.mubr.msk.f32.mxu1 %vm2023_vm12, %v2016_v8 }
 0x2a4   : > { %v2462_v54 = vadd.f32 %v2461_v56, %v2431_v15  ;;  %v2393_v0 = vadd.f32 %v2768_v5, %v2392_v60 }
 0x2a6   : > { %v2463_v34 = vadd.f32 %v2462_v54, %v2432_v11 }
 0x2a9   : > { %v2017_v42 = vld [vmem:[#allocation3 + $0xf8] sm:$0xff] }
 0x2aa   : > { %2794 = vmatmul.mubr.msk.f32.gmra.mxu1 %vm2023_vm12, %v2017_v42 }
 0x2b3   : > { %v2771_v47 = vpop.f32.mrf.mxu0 }
 0x2b4   : > { %2364 = vst [vmem:[%s3968_s15 + $0x78] sm:$0xff] %v2771_v47  ;;  %v2434_v36 = vmul.f32 %v2771_v47, %v2771_v47 }
 0x2b5   : > { %v2260_v35 = vpop.f32.mrf.mxu0 }
 0x2b6   : > { %2363 = vst [vmem:[%s3968_s15 + $0x70] sm:$0xff] %v2260_v35  ;;  %v2394_v37 = vadd.f32 %v2393_v0, %v2260_v35  ;;  %v2433_v13 = vmul.f32 %v2260_v35, %v2260_v35 }
 0x2b8   : > { %v2395_v26 = vadd.f32 %v2771_v47, %v2394_v37  ;;  %v2464_v62 = vadd.f32 %v2463_v34, %v2433_v13 }
 0x2ba   : > { %v2465_v17 = vadd.f32 %v2464_v62, %v2434_v36 }
 0x2c7   : > { %v2774_v31 = vpop.f32.mrf.mxu1 }
 0x2c8   : > { %2366 = vst [vmem:[%s3968_s15 + $0x88] sm:$0xff] %v2774_v31  ;;  %v2436_v7 = vmul.f32 %v2774_v31, %v2774_v31 }
 0x2c9   : > { %v2270_v2 = vpop.f32.mrf.mxu1 }
 0x2ca   : > { %2365 = vst [vmem:[%s3968_s15 + $0x80] sm:$0xff] %v2270_v2  ;;  %v2396_v10 = vadd.f32 %v2395_v26, %v2270_v2  ;;  %v2435_v44 = vmul.f32 %v2270_v2, %v2270_v2 }
 0x2cc   : > { %v2466_v48 = vadd.f32 %v2465_v17, %v2435_v44  ;;  %v2397_v20 = vadd.f32 %v2774_v31, %v2396_v10 }
 0x2ce   : > { %v2467_v45 = vadd.f32 %v2466_v48, %v2436_v7 }
 0x2df   : > { %v2777_v52 = vpop.f32.mrf.mxu1 }
 0x2e0   : > { %2368 = vst [vmem:[%s3968_s15 + $0x98] sm:$0xff] %v2777_v52  ;;  %v2438_v16 = vmul.f32 %v2777_v52, %v2777_v52 }
 0x2e1   : > { %v2280_v53 = vpop.f32.mrf.mxu1 }
 0x2e2   : > { %2367 = vst [vmem:[%s3968_s15 + $0x90] sm:$0xff] %v2280_v53  ;;  %v2398_v22 = vadd.f32 %v2397_v20, %v2280_v53  ;;  %v2437_v1 = vmul.f32 %v2280_v53, %v2280_v53 }
 0x2e4   : > { %v2468_v19 = vadd.f32 %v2467_v45, %v2437_v1  ;;  %v2399_v57 = vadd.f32 %v2777_v52, %v2398_v22 }
 0x2e6   : > { %v2469_v51 = vadd.f32 %v2468_v19, %v2438_v16 }
 0x2f7   : > { %v2780_v9 = vpop.f32.mrf.mxu1 }
 0x2f8   : > { %2370 = vst [vmem:[%s3968_s15 + $0xa8] sm:$0xff] %v2780_v9  ;;  %v2440_v30 = vmul.f32 %v2780_v9, %v2780_v9 }
 0x2f9   : > { %v2290_v4 = vpop.f32.mrf.mxu1 }
 0x2fa   : > { %2369 = vst [vmem:[%s3968_s15 + $0xa0] sm:$0xff] %v2290_v4  ;;  %v2400_v38 = vadd.f32 %v2399_v57, %v2290_v4  ;;  %v2439_v23 = vmul.f32 %v2290_v4, %v2290_v4 }
 0x2fc   : > { %v2470_v24 = vadd.f32 %v2469_v51, %v2439_v23  ;;  %v2401_v21 = vadd.f32 %v2780_v9, %v2400_v38 }
 0x2fe   : > { %v2471_v14 = vadd.f32 %v2470_v24, %v2440_v30 }
 0x30f   : > { %v2783_v50 = vpop.f32.mrf.mxu1 }
 0x310   : > { %2372 = vst [vmem:[%s3968_s15 + $0xb8] sm:$0xff] %v2783_v50  ;;  %v2442_v18 = vmul.f32 %v2783_v50, %v2783_v50 }
 0x311   : > { %v2300_v55 = vpop.f32.mrf.mxu1 }
 0x312   : > { %2371 = vst [vmem:[%s3968_s15 + $0xb0] sm:$0xff] %v2300_v55  ;;  %v2402_v63 = vadd.f32 %v2401_v21, %v2300_v55  ;;  %v2441_v25 = vmul.f32 %v2300_v55, %v2300_v55 }
 0x314   : > { %v2472_v3 = vadd.f32 %v2471_v14, %v2441_v25  ;;  %v2403_v59 = vadd.f32 %v2783_v50, %v2402_v63 }
 0x316   : > { %v2473_v28 = vadd.f32 %v2472_v3, %v2442_v18 }
 0x327   : > { %v2786_v32 = vpop.f32.mrf.mxu1 }
 0x328   : > { %2374 = vst [vmem:[%s3968_s15 + $0xc8] sm:$0xff] %v2786_v32  ;;  %v2444_v39 = vmul.f32 %v2786_v32, %v2786_v32 }
 0x329   : > { %v2310_v41 = vpop.f32.mrf.mxu1 }
 0x32a   : > { %2373 = vst [vmem:[%s3968_s15 + $0xc0] sm:$0xff] %v2310_v41  ;;  %v2443_v56 = vmul.f32 %v2310_v41, %v2310_v41  ;;  %v2404_v12 = vadd.f32 %v2403_v59, %v2310_v41 }
 0x32c   : > { %v2474_v61 = vadd.f32 %v2473_v28, %v2443_v56  ;;  %v2405_v46 = vadd.f32 %v2786_v32, %v2404_v12 }
 0x32e   : > { %v2475_v5 = vadd.f32 %v2474_v61, %v2444_v39 }
 0x33f   : > { %v2789_v6 = vpop.f32.mrf.mxu1 }
 0x340   : > { %2376 = vst [vmem:[%s3968_s15 + $0xd8] sm:$0xff] %v2789_v6  ;;  %v2446_v29 = vmul.f32 %v2789_v6, %v2789_v6 }
 0x341   : > { %v2320_v27 = vpop.f32.mrf.mxu1 }
 0x342   : > { %2375 = vst [vmem:[%s3968_s15 + $0xd0] sm:$0xff] %v2320_v27  ;;  %v2445_v40 = vmul.f32 %v2320_v27, %v2320_v27  ;;  %v2406_v43 = vadd.f32 %v2405_v46, %v2320_v27 }
 0x344   : > { %v2476_v33 = vadd.f32 %v2475_v5, %v2445_v40  ;;  %v2407_v11 = vadd.f32 %v2789_v6, %v2406_v43 }
 0x346   : > { %v2477_v8 = vadd.f32 %v2476_v33, %v2446_v29 }
 0x357   : > { %v2792_v49 = vpop.f32.mrf.mxu1 }
 0x358   : > { %2378 = vst [vmem:[%s3968_s15 + $0xe8] sm:$0xff] %v2792_v49  ;;  %v2448_v54 = vmul.f32 %v2792_v49, %v2792_v49 }
 0x359   : > { %v2330_v58 = vpop.f32.mrf.mxu1 }
 0x35a   : > { %2377 = vst [vmem:[%s3968_s15 + $0xe0] sm:$0xff] %v2330_v58  ;;  %v2447_v60 = vmul.f32 %v2330_v58, %v2330_v58  ;;  %v2408_v15 = vadd.f32 %v2407_v11, %v2330_v58 }
 0x35c   : > { %v2478_v0 = vadd.f32 %v2477_v8, %v2447_v60  ;;  %v2409_v42 = vadd.f32 %v2792_v49, %v2408_v15 }
 0x35e   : > { %v2479_v37 = vadd.f32 %v2478_v0, %v2448_v54 }
 0x36a   : > { %v2795_v34 = vpop.f32.mrf.mxu1 }
 0x36b   : > { %2380 = vst [vmem:[%s3968_s15 + $0xf8] sm:$0xff] %v2795_v34 }
 0x36c   : > { %v2340_v47 = vpop.f32.mrf.mxu1 }
 0x36d   : > { %2379 = vst [vmem:[%s3968_s15 + $0xf0] sm:$0xff] %v2340_v47  ;;  %v2410_v35 = vadd.f32 %v2409_v42, %v2340_v47  ;;  %v2449_v36 = vmul.f32 %v2340_v47, %v2340_v47 }
 0x36e   : > { %2878 = shalt.err (!%p2875_p3)
}
 0x36f   : > { %s2879_s18 = scalar_lea.hbm %s4080_s27, 4096  ;;  %s2883_s15 = scalar_lea.hbm %s4199_s4, 8192 }
 0x370   : > { %p2880_p4 = scmp.ne.s32.totalorder %s4080_s27, %s2879_s18  ;;  %p2884_p9 = scmp.lt.s32.totalorder %s4080_s27, %s4199_s4 }
 0x371   : > { %p2885_p10 = scmp.lt.s32.totalorder %s2883_s15, %s2879_s18 }
 0x372   : > { %p2881_p7 = pnand %p2880_p4, %p3071_p5 }
 0x373   : > { %p2886_p11 = por %p2885_p10, %p2884_p9 }
 0x374   : > { %p2882_p8 = pneg %p2881_p7 }
 0x376   : > { %p2887_p12 = pnand %p2886_p11, %p2882_p8 }
 0x378   : > { %2890 = shalt.err (!%p2887_p12)
}
 0x379   : > { %s2993_s26 = smov 128   ;;  %v2450_v13 = vmul.f32 %v2795_v34, %v2795_v34  ;;  %v2411_v26 = vadd.f32 %v2795_v34, %v2410_v35  ;;  %v2480_v62 = vadd.f32 %v2479_v37, %v2449_v36  ;;  %s2494_s8 = sand.u32 1, %s3052_s23  }
 0x37a   : > { %2806 = dma.vmem_to_hbm [thread:$0]  (%p3071_p5), %s4083_s17, 4096, %s4080_s27, %s2490_s7, %s2993_s26, %s2993_s26, %s2985_s13  }
 0x37b   : > { %v2412_v17 = vrot.slane %v2411_v26, 4  ;;  %v2481_v31 = vadd.f32 %v2480_v62, %v2450_v13  ;;  %s2695_s9 = sshll.u32 %s3052_s23, 4  ;;  %s254_s10 = scalar_lea.vmem [#allocation6], %s3957_s11 }
 0x37c   : > { %s2527_s12 = sshll.u32 %s254_s10, 4  ;;  %s260_s13 = scalar_lea.vmem [#allocation8], %s3957_s11  ;;  %s4121_s12 = int_to_ptr.vmem [resolvable:$true] %s2527_s12 }
 0x37d   : > { %v2413_v2 = vadd.f32 %v2412_v17, %v2411_v26  ;;  %v2482_v7 = vrot.slane %v2481_v31, 4  ;;  %s2540_s17 = sshll.u32 %s260_s13, 4  ;;  %s4119_s18 = scalar_lea.hbm %s4200_s5, %s2695_s9  ;;  %s4128_s17 = int_to_ptr.vmem [resolvable:$true] %s2540_s17 }
 0x37e   : > { %s4126_s14 = scalar_lea.hbm %s4201_s6, %s2695_s9  ;;  %s4130_s15 = scalar_lea.sflag [#allocation7], %s2494_s8 }
 0x37f   : > { %v2414_v10 = vrot.slane %v2413_v2, 2  ;;  %v2483_v44 = vadd.f32 %v2482_v7, %v2481_v31  ;;  %s2891_s16 = scalar_lea.vmem %s4121_s12, 16  ;;  %s2994_s20 = smov [#allocation6]  }
 0x380   : > { %p2892_p13 = scmp.ne.s32.totalorder %s4121_s12, %s2891_s16  ;;  %s2895_s26 = sshll.u32 %s2994_s20, 4  ;;  %s2896_s26 = int_to_ptr.vmem [resolvable:$false] %s2895_s26 }
 0x381   : > { %v2484_v48 = vrot.slane %v2483_v44, 2  ;;  %v2415_v20 = vadd.f32 %v2414_v10, %v2413_v2  ;;  %s2897_s27 = scalar_lea.vmem %s2896_s26, 32  ;;  %p2898_p2 = scmp.lt.s32.totalorder %s4121_s12, %s2896_s26 }
 0x382   : > { %p2893_p0 = pnand %p2892_p13, %p3071_p5  ;;  %p2899_p3 = scmp.lt.s32.totalorder %s2897_s27, %s2891_s16 }
 0x383   : > { %v2416_v45 = vrot.slane %v2415_v20, 1  ;;  %v2485_v52 = vadd.f32 %v2484_v48, %v2483_v44 }
 0x384   : > { %p2894_p1 = pneg %p2893_p0  ;;  %p2900_p4 = por %p2899_p3, %p2898_p2 }
 0x385   : > { %v2417_v53 = vadd.f32 %v2416_v45, %v2415_v20  ;;  %v2486_v16 = vrot.slane %v2485_v52, 1 }
 0x386   : > { %p2901_p7 = pnand %p2900_p4, %p2894_p1 }
 0x387   : > { %2418 = vst [vmem:[%s254_s10] sm:$0x1] %v2417_v53  ;;  %v2487_v22 = vadd.f32 %v2486_v16, %v2485_v52 }
 0x388   : > { %2904 = shalt.err (!%p2901_p7)
}
 0x389   : > { %s2905_s8 = scalar_lea.hbm %s4119_s18, 16  ;;  %s2909_s7 = scalar_lea.hbm %s4200_s5, 32 }
 0x38a   : > { %p2906_p8 = scmp.ne.s32.totalorder %s4119_s18, %s2905_s8  ;;  %p2910_p11 = scmp.lt.s32.totalorder %s4119_s18, %s4200_s5 }
 0x38b   : > { %p2911_p12 = scmp.lt.s32.totalorder %s2909_s7, %s2905_s8 }
 0x38c   : > { %p2907_p9 = pnand %p2906_p8, %p3071_p5 }
 0x38d   : > { %p2912_p13 = por %p2911_p12, %p2910_p11 }
 0x38e   : > { %p2908_p10 = pneg %p2907_p9 }
 0x390   : > { %p2913_p0 = pnand %p2912_p13, %p2908_p10 }
 0x392   : > { %2916 = shalt.err (!%p2913_p0)
}
 0x393   : > { %2807 = dma.vmem_to_hbm [thread:$0]  (%p3071_p5), %s4121_s12, 16, %s4119_s18, %s4130_s15   ;;  %2488 = vst [vmem:[%s260_s13] sm:$0x1] %v2487_v22 }
 0x394   : > { %s2917_s16 = scalar_lea.vmem %s4128_s17, 16  ;;  %s2995_s20 = smov [#allocation8]  }
 0x395   : > { %p2918_p1 = scmp.ne.s32.totalorder %s4128_s17, %s2917_s16  ;;  %s2921_s26 = sshll.u32 %s2995_s20, 4  ;;  %s2922_s26 = int_to_ptr.vmem [resolvable:$false] %s2921_s26 }
 0x396   : > { %s2923_s27 = scalar_lea.vmem %s2922_s26, 32  ;;  %p2924_p4 = scmp.lt.s32.totalorder %s4128_s17, %s2922_s26 }
 0x397   : > { %p2919_p2 = pnand %p2918_p1, %p3071_p5  ;;  %p2925_p7 = scmp.lt.s32.totalorder %s2923_s27, %s2917_s16 }
 0x399   : > { %p2920_p3 = pneg %p2919_p2  ;;  %p2926_p8 = por %p2925_p7, %p2924_p4 }
 0x39b   : > { %p2927_p9 = pnand %p2926_p8, %p2920_p3 }
 0x39d   : > { %2930 = shalt.err (!%p2927_p9)
}
 0x39e   : > { %s2931_s11 = scalar_lea.hbm %s4126_s14, 16  ;;  %s2935_s18 = scalar_lea.hbm %s4201_s6, 32 }
 0x39f   : > { %p2932_p10 = scmp.ne.s32.totalorder %s4126_s14, %s2931_s11  ;;  %p2936_p13 = scmp.lt.s32.totalorder %s4126_s14, %s4201_s6 }
 0x3a0   : > { %p2937_p0 = scmp.lt.s32.totalorder %s2935_s18, %s2931_s11 }
 0x3a1   : > { %p2933_p11 = pnand %p2932_p10, %p3071_p5 }
 0x3a2   : > { %p2938_p1 = por %p2937_p0, %p2936_p13 }
 0x3a3   : > { %p2934_p12 = pneg %p2933_p11 }
 0x3a5   : > { %p2939_p2 = pnand %p2938_p1, %p2934_p12 }
 0x3a7   : > { %2942 = shalt.err (!%p2939_p2)
}
 0x3a8   : > { %2808 = dma.vmem_to_hbm [thread:$0]  (%p3071_p5), %s4128_s17, 16, %s4126_s14, %s4130_s15  }
 0x3a9 PF: > { %p2822_p3 = scmp.ge.s32.totalorder %s2981_s3, 2  ;;  %s2552_s10 = sand.u32 1, %s2969_s21  }
 0x3aa   : > { %s2553_s7 = scalar_lea.sflag [#allocation5], %s2552_s10 }
 0x3ab   : > { %p2813_p4 = pnand %p2822_p3, %p3075_p6 }
 0x3ad   : > { %p2814_p7 = pneg %p2813_p4 }
 0x3af   : > { %2960 = dma.done.wait (%p2814_p7), %s2553_s7, 4096  }
 0x3b0   : > { %2962 = vsyncadd (%p2814_p7), %s2553_s7, 4294963200  ;;  %s2561_s23 = sand.u32 1, %s2652_s24  }
 0x3b1   : > { %s2562_s29 = scalar_lea.sflag [#allocation7], %s2561_s23 }
 0x3b2   : > { %2964 = dma.done.wait (%p2814_p7), %s2562_s29, 32  }
 0x3b3   : > { %2966 = vsyncadd (%p2814_p7), %s2562_s29, 4294967264  ;;  %p20_p5 = scmp.ge.s32.totalorder %s3056_s25, 4   ;;  %s4204_s21 = smov %s2973_s22 }
 0x3b4   : > { %s4205_s22 = smov %s2977_s2  ;;  %s4206_s2 = smov %s3069_s28 }
 0x3b5   : > { %s4207_s3 = smov %s3056_s25  ;;  %22 = sbr.rel (!%p20_p5) target bundleno = 5 (0x5), region = 106 }
 0x3ba   :  { %2574 = vsyncpa [#allocation5], 1 }
 0x3bb   :  { %2576 = vsyncpa [#allocation5 + $0x1], 1 }
 0x3bc   :  { %2577 = vsyncpa [#allocation7], 1 }
 0x3bd   :  { %2579 = vsyncpa [#allocation7 + $0x1], 1 }

</bundles_post_ra>
